<compile_context>
chip_gen: v5e
topology: v5e:2x2
jax: 0.10.0
libtpu: 0.0.40
codegen_flags: <defaults>
</compile_context>

<pallas_src>
import functools

import jax
import jax.numpy as jnp
import numpy as np
from jax.experimental import pallas as pl
from jax.experimental.pallas import tpu as pltpu

DILATIONS = (6, 12, 18, 24)
D_MAX = max(DILATIONS)
# 9 unique tap offsets across all branches: 0 and +-d for each dilation.
SHIFTS = tuple(sorted({0} | {s for d in DILATIONS for s in (-d, d)}))
BN_EPS = 1e-5


# ------------------------------- Pallas kernel -------------------------------
def _aspp_kernel(x_ref, w_ref, b_ref, out_ref, xa_ref):
    # x_ref   : (B, C, L)        bf16, whole (small) batch
    # w_ref   : (RB, 9C)         bf16, fused (BN-scaled) weight rows for this block
    # b_ref   : (RB, 1)          f32, folded BatchNorm bias for this block
    # out_ref : (RB, B*L)        f32, lane-dense output rows for this block
    # xa_ref  : (9C, B*L)        bf16 VMEM scratch: shifted/stacked input (im2col)
    B, C, L = x_ref.shape
    RB = out_ref.shape[0]

    # ---- build X_all: 9 shifted copies of x, batch folded into lanes --------
    # Zero-init realizes the conv zero-padding; interior filled from x directly.
    xa_ref[...] = jnp.zeros_like(xa_ref)
    for j, s in enumerate(SHIFTS):            # static unroll: 9 shifts
        for b in range(B):                    # static unroll: batch -> lane segment
            if s >= 0:
                # out position t reads x[t + s]; valid t in [0, L - s)
                xa_ref[j * C:(j + 1) * C, b * L:b * L + (L - s)] = x_ref[b, :, s:]
            else:
                # valid t in [-s, L)
                xa_ref[j * C:(j + 1) * C, b * L - s:(b + 1) * L] = x_ref[b, :, :L + s]

    # ---- one well-shaped MXU matmul for every branch -------------------------
    y = jnp.dot(w_ref[...], xa_ref[...],
                preferred_element_type=jnp.float32)          # (RB, B*L) f32
    bias = b_ref[...]                                        # (RB, 1)

    is_last = pl.program_id(0) == pl.num_programs(0) - 1

    @pl.when(pl.program_id(0) < pl.num_programs(0) - 1)
    def _():
        # Blocks that contain only conv branches: bias + ReLU, one dense store.
        out_ref[...] = jnp.maximum(y + bias, 0.0).astype(out_ref.dtype)

    @pl.when(is_last)
    def _():
        # Last block: its final C rows are the global-average-pool branch.
        if RB > C:
            out_ref[0:RB - C, :] = jnp.maximum(
                y[0:RB - C, :] + bias[0:RB - C, :], 0.0).astype(out_ref.dtype)
        y6 = y[RB - C:, :]                                   # (C, B*L) = wg' @ x
        segs = []
        for b in range(B):                                    # per-batch lane mean
            gb = jnp.mean(y6[:, b * L:(b + 1) * L], axis=1, keepdims=True)
            segs.append(jnp.broadcast_to(gb, (C, L)))
        g = segs[0] if B == 1 else jnp.concatenate(segs, axis=1)   # (C, B*L)
        out_ref[RB - C:, :] = jnp.maximum(
            g + bias[RB - C:, :], 0.0).astype(out_ref.dtype)


# --------------------------------- wrapper -----------------------------------
def _default_row_blocks():
    # v7x has 2 TensorCores/chip -> 2-way parallel split of the output rows;
    # v5e/v6e have a single TC -> one grid step avoids per-step overhead.
    try:
        kind = jax.devices()[0].device_kind.lower()
    except Exception:
        return 1
    return 2 if "v7" in kind else 1


@functools.partial(jax.jit, static_argnames=("row_blocks",))
def _aspp1d_forward_impl(x, w_fused, bias_fused, *, row_blocks):
    B, C, L = x.shape
    NB = 6 * C
    assert NB % row_blocks == 0
    RB = NB // row_blocks
    assert RB % C == 0 and RB >= C, "row block must contain whole branches"

    xb = x.astype(jnp.bfloat16)      # bf16 MXU inputs, f32 accumulation in-kernel

    grid_spec = pltpu.PrefetchScalarGridSpec(
        num_scalar_prefetch=0,
        grid=(row_blocks,),
        in_specs=[
            pl.BlockSpec((B, C, L), lambda r: (0, 0, 0)),        # x (whole batch)
            pl.BlockSpec((RB, 9 * C), lambda r: (r, 0)),         # fused weight rows
            pl.BlockSpec((RB, 1), lambda r: (r, 0)),             # folded BN bias rows
        ],
        out_specs=pl.BlockSpec((RB, B * L), lambda r: (r, 0)),   # lane-dense output
        scratch_shapes=[pltpu.VMEM((9 * C, B * L), jnp.bfloat16)],
    )

    out_folded = pl.pallas_call(
        _aspp_kernel,
        out_shape=jax.ShapeDtypeStruct((NB, B * L), jnp.float32),
        grid_spec=grid_spec,
        compiler_params=pltpu.CompilerParams(
            dimension_semantics=("parallel",)),
    )(xb, w_fused, bias_fused)

    # (6C, B*L) -> (B, 6C, L): pure layout plumbing back to the NCL convention.
    return jnp.transpose(out_folded.reshape(NB, B, L), (1, 0, 2))


def aspp1d_forward(x, w_fused, bias_fused, row_blocks=None):
    if row_blocks is None:
        row_blocks = _default_row_blocks()
    return _aspp1d_forward_impl(x, w_fused, bias_fused, row_blocks=row_blocks)


# --------------------- parameter folding / fused weight ----------------------
def build_aspp_params(w1_raw, w_dil_raw, wg_raw, bn):
    """Fold inference-mode BatchNorm into the convs and pack all six branches
    into one fused weight (6C, 9C) bf16 + one bias (6C, 1) f32."""
    C = w1_raw.shape[0]
    scales, biases = [], []
    for (gamma, beta, mean, var) in bn:
        s = gamma / jnp.sqrt(var + BN_EPS)
        scales.append(s)
        biases.append(beta - mean * s)

    j0 = SHIFTS.index(0)
    W = jnp.zeros((6 * C, 9 * C), jnp.float32)
    # branch 1: 1x1 conv at shift 0
    W = W.at[0:C, j0 * C:(j0 + 1) * C].set(scales[0][:, None] * w1_raw[:, :, 0])
    # branches 2-5: k=3 dilated convs, tap k -> shift (k-1)*d
    for i, d in enumerate(DILATIONS):
        for k in range(3):
            j = SHIFTS.index((k - 1) * d)
            W = W.at[(i + 1) * C:(i + 2) * C, j * C:(j + 1) * C].set(
                scales[i + 1][:, None] * w_dil_raw[i][:, :, k])
    # branch 6: global-pool 1x1 conv at shift 0 (lane-mean taken in-kernel)
    W = W.at[5 * C:6 * C, j0 * C:(j0 + 1) * C].set(
        scales[5][:, None] * wg_raw[:, :, 0])

    bias = jnp.concatenate(biases)[:, None]                    # (6C, 1)
    return W.astype(jnp.bfloat16), bias.astype(jnp.float32)


# ------------------------ pure-JAX reference (for check) ---------------------
def _ref_forward(x, params):
    def conv1d(inp, w, dilation):
        pad = (w.shape[-1] - 1) // 2 * dilation
        return jax.lax.conv_general_dilated(
            inp, w, window_strides=(1,), padding=[(pad, pad)],
            rhs_dilation=(dilation,), dimension_numbers=('NCH', 'OIH', 'NCH'),
            precision=jax.lax.Precision.HIGHEST)

    def bn_relu(y, gamma, beta, mean, var):
        s = gamma / jnp.sqrt(var + BN_EPS)
        b = beta - mean * s
        return jnp.maximum(y * s[None, :, None] + b[None, :, None], 0.0)

    outs = [bn_relu(conv1d(x, params['w1'], 1), *params['bn'][0])]
    for i, d in enumerate(DILATIONS):
        outs.append(bn_relu(conv1d(x, params['w_dil_raw'][i], d),
                            *params['bn'][i + 1]))
    m = jnp.mean(x, axis=-1, keepdims=True)
    g = bn_relu(conv1d(m, params['wg'], 1), *params['bn'][5])
    outs.append(jnp.broadcast_to(g, x.shape))
    return jnp.concatenate(outs, axis=1)


# --------------------------------- main ---------------------------------------
if __name__ == "__main__":
    B, C, L = 2, 32, 64          # batch=2, n_filters=32 (module default), seq=64

    key = jax.random.PRNGKey(0)
    keys = jax.random.split(key, 32)

    x = jax.random.normal(keys[0], (B, C, L), jnp.float32)

    # Conv weights (PyTorch layout: (out_c, in_c, k)), deterministic init.
    w1_raw = jax.random.normal(keys[1], (C, C, 1), jnp.float32) * 0.1
    w_dil_raw = [jax.random.normal(keys[2 + i], (C, C, 3), jnp.float32) * 0.1
                 for i in range(4)]
    wg_raw = jax.random.normal(keys[6], (C, C, 1), jnp.float32) * 0.1

    # BatchNorm (eval mode) params per branch: (gamma, beta, running_mean, running_var)
    bn = []
    for i in range(6):
        gk, bk, mk, vk = jax.random.split(keys[10 + i], 4)
        gamma = 0.5 + jax.random.uniform(gk, (C,), jnp.float32)
        beta = jax.random.normal(bk, (C,), jnp.float32) * 0.1
        mean = jax.random.normal(mk, (C,), jnp.float32) * 0.1
        var = 0.5 + jax.random.uniform(vk, (C,), jnp.float32)
        bn.append((gamma, beta, mean, var))

    w_fused, bias_fused = build_aspp_params(w1_raw, w_dil_raw, wg_raw, bn)

    out = aspp1d_forward(x, w_fused, bias_fused)
    out = jax.block_until_ready(out)
    assert out.shape == (B, 6 * C, L), out.shape

    ref = _ref_forward(x, {'w1': w1_raw, 'w_dil_raw': w_dil_raw,
                           'wg': wg_raw, 'bn': bn})
    # bf16 MXU inputs (f32 accumulation) -> tolerance loosened vs. pure f32.
    np.testing.assert_allclose(np.asarray(out), np.asarray(ref),
                               rtol=2e-2, atol=3e-2)

    print("KERNEL_OK")
</pallas_src>

<mosaic_0001>
module attributes {stable_mosaic.version = 11 : i64} {
  func.func @_aspp_kernel(%arg0: i32, %arg1: memref<2x32x64xbf16, #tpu.memory_space<vmem>>, %arg2: memref<192x288xbf16, #tpu.memory_space<vmem>>, %arg3: memref<192x1xf32, #tpu.memory_space<vmem>>, %arg4: memref<192x128xf32, #tpu.memory_space<vmem>>, %arg5: memref<288x128xbf16, #tpu.memory_space<vmem>>) attributes {dimension_semantics = [#tpu.dimension_semantics<parallel>], iteration_bounds = array<i64: 1>, scalar_prefetch = 0 : i64, scratch_operands = 1 : i64, tpu.core_type = #tpu.core_type<tc>, window_params = [{pipeline_mode = #tpu.pipeline_mode<synchronous>, transform_indices = @transform_0, window_bounds = array<i64: 2, 32, 64>}, {transform_indices = @transform_1, window_bounds = array<i64: 192, 288>}, {transform_indices = @transform_2, window_bounds = array<i64: 192, 1>}, {transform_indices = @transform_3, window_bounds = array<i64: 192, 128>}]} {
    %cst = arith.constant 0.000000e+00 : bf16
    %0 = vector.broadcast %cst : bf16 to vector<288x128xbf16>
    %c0 = arith.constant 0 : index
    %c0_0 = arith.constant 0 : index
    %1 = vector.load %arg5[%c0, %c0_0] : memref<288x128xbf16, #tpu.memory_space<vmem>>, vector<288x128xbf16>
    tpu.vector_store %arg5[%c0, %c0_0], %0 {strides = array<i32>} : memref<288x128xbf16, #tpu.memory_space<vmem>>, vector<288x128xbf16>,
    %c0_1 = arith.constant 0 : index
    %c0_2 = arith.constant 0 : index
    %c0_3 = arith.constant 0 : index
    %2 = vector.load %arg1[%c0_1, %c0_2, %c0_3] : memref<2x32x64xbf16, #tpu.memory_space<vmem>>, vector<1x32x40xbf16>
    %3 = vector.shape_cast %2 : vector<1x32x40xbf16> to vector<32x40xbf16>
    %c0_4 = arith.constant 0 : index
    %c24 = arith.constant 24 : index
    %4 = vector.load %arg5[%c0_4, %c24] : memref<288x128xbf16, #tpu.memory_space<vmem>>, vector<32x40xbf16>
    tpu.vector_store %arg5[%c0_4, %c24], %3 {strides = array<i32>} : memref<288x128xbf16, #tpu.memory_space<vmem>>, vector<32x40xbf16>,
    %c1 = arith.constant 1 : index
    %c0_5 = arith.constant 0 : index
    %c0_6 = arith.constant 0 : index
    %5 = vector.load %arg1[%c1, %c0_5, %c0_6] : memref<2x32x64xbf16, #tpu.memory_space<vmem>>, vector<1x32x40xbf16>
    %6 = vector.shape_cast %5 : vector<1x32x40xbf16> to vector<32x40xbf16>
    %c0_7 = arith.constant 0 : index
    %c88 = arith.constant 88 : index
    %7 = vector.load %arg5[%c0_7, %c88] : memref<288x128xbf16, #tpu.memory_space<vmem>>, vector<32x40xbf16>
    tpu.vector_store %arg5[%c0_7, %c88], %6 {strides = array<i32>} : memref<288x128xbf16, #tpu.memory_space<vmem>>, vector<32x40xbf16>,
    %c0_8 = arith.constant 0 : index
    %c0_9 = arith.constant 0 : index
    %c0_10 = arith.constant 0 : index
    %8 = vector.load %arg1[%c0_8, %c0_9, %c0_10] : memref<2x32x64xbf16, #tpu.memory_space<vmem>>, vector<1x32x46xbf16>
    %9 = vector.shape_cast %8 : vector<1x32x46xbf16> to vector<32x46xbf16>
    %c32 = arith.constant 32 : index
    %c18 = arith.constant 18 : index
    %10 = vector.load %arg5[%c32, %c18] : memref<288x128xbf16, #tpu.memory_space<vmem>>, vector<32x46xbf16>
    tpu.vector_store %arg5[%c32, %c18], %9 {strides = array<i32>} : memref<288x128xbf16, #tpu.memory_space<vmem>>, vector<32x46xbf16>,
    %c1_11 = arith.constant 1 : index
    %c0_12 = arith.constant 0 : index
    %c0_13 = arith.constant 0 : index
    %11 = vector.load %arg1[%c1_11, %c0_12, %c0_13] : memref<2x32x64xbf16, #tpu.memory_space<vmem>>, vector<1x32x46xbf16>
    %12 = vector.shape_cast %11 : vector<1x32x46xbf16> to vector<32x46xbf16>
    %c32_14 = arith.constant 32 : index
    %c82 = arith.constant 82 : index
    %13 = vector.load %arg5[%c32_14, %c82] : memref<288x128xbf16, #tpu.memory_space<vmem>>, vector<32x46xbf16>
    tpu.vector_store %arg5[%c32_14, %c82], %12 {strides = array<i32>} : memref<288x128xbf16, #tpu.memory_space<vmem>>, vector<32x46xbf16>,
    %c0_15 = arith.constant 0 : index
    %c0_16 = arith.constant 0 : index
    %c0_17 = arith.constant 0 : index
    %14 = vector.load %arg1[%c0_15, %c0_16, %c0_17] : memref<2x32x64xbf16, #tpu.memory_space<vmem>>, vector<1x32x52xbf16>
    %15 = vector.shape_cast %14 : vector<1x32x52xbf16> to vector<32x52xbf16>
    %c64 = arith.constant 64 : index
    %c12 = arith.constant 12 : index
    %16 = vector.load %arg5[%c64, %c12] : memref<288x128xbf16, #tpu.memory_space<vmem>>, vector<32x52xbf16>
    tpu.vector_store %arg5[%c64, %c12], %15 {strides = array<i32>} : memref<288x128xbf16, #tpu.memory_space<vmem>>, vector<32x52xbf16>,
    %c1_18 = arith.constant 1 : index
    %c0_19 = arith.constant 0 : index
    %c0_20 = arith.constant 0 : index
    %17 = vector.load %arg1[%c1_18, %c0_19, %c0_20] : memref<2x32x64xbf16, #tpu.memory_space<vmem>>, vector<1x32x52xbf16>
    %18 = vector.shape_cast %17 : vector<1x32x52xbf16> to vector<32x52xbf16>
    %c64_21 = arith.constant 64 : index
    %c76 = arith.constant 76 : index
    %19 = vector.load %arg5[%c64_21, %c76] : memref<288x128xbf16, #tpu.memory_space<vmem>>, vector<32x52xbf16>
    tpu.vector_store %arg5[%c64_21, %c76], %18 {strides = array<i32>} : memref<288x128xbf16, #tpu.memory_space<vmem>>, vector<32x52xbf16>,
    %c0_22 = arith.constant 0 : index
    %c0_23 = arith.constant 0 : index
    %c0_24 = arith.constant 0 : index
    %20 = vector.load %arg1[%c0_22, %c0_23, %c0_24] : memref<2x32x64xbf16, #tpu.memory_space<vmem>>, vector<1x32x58xbf16>
    %21 = vector.shape_cast %20 : vector<1x32x58xbf16> to vector<32x58xbf16>
    %c96 = arith.constant 96 : index
    %c6 = arith.constant 6 : index
    %22 = vector.load %arg5[%c96, %c6] : memref<288x128xbf16, #tpu.memory_space<vmem>>, vector<32x58xbf16>
    tpu.vector_store %arg5[%c96, %c6], %21 {strides = array<i32>} : memref<288x128xbf16, #tpu.memory_space<vmem>>, vector<32x58xbf16>,
    %c1_25 = arith.constant 1 : index
    %c0_26 = arith.constant 0 : index
    %c0_27 = arith.constant 0 : index
    %23 = vector.load %arg1[%c1_25, %c0_26, %c0_27] : memref<2x32x64xbf16, #tpu.memory_space<vmem>>, vector<1x32x58xbf16>
    %24 = vector.shape_cast %23 : vector<1x32x58xbf16> to vector<32x58xbf16>
    %c96_28 = arith.constant 96 : index
    %c70 = arith.constant 70 : index
    %25 = vector.load %arg5[%c96_28, %c70] : memref<288x128xbf16, #tpu.memory_space<vmem>>, vector<32x58xbf16>
    tpu.vector_store %arg5[%c96_28, %c70], %24 {strides = array<i32>} : memref<288x128xbf16, #tpu.memory_space<vmem>>, vector<32x58xbf16>,
    %c0_29 = arith.constant 0 : index
    %c0_30 = arith.constant 0 : index
    %c0_31 = arith.constant 0 : index
    %26 = vector.load %arg1[%c0_29, %c0_30, %c0_31] : memref<2x32x64xbf16, #tpu.memory_space<vmem>>, vector<1x32x64xbf16>
    %27 = vector.shape_cast %26 : vector<1x32x64xbf16> to vector<32x64xbf16>
    %c128 = arith.constant 128 : index
    %c0_32 = arith.constant 0 : index
    %28 = vector.load %arg5[%c128, %c0_32] : memref<288x128xbf16, #tpu.memory_space<vmem>>, vector<32x64xbf16>
    tpu.vector_store %arg5[%c128, %c0_32], %27 {strides = array<i32>} : memref<288x128xbf16, #tpu.memory_space<vmem>>, vector<32x64xbf16>,
    %c1_33 = arith.constant 1 : index
    %c0_34 = arith.constant 0 : index
    %c0_35 = arith.constant 0 : index
    %29 = vector.load %arg1[%c1_33, %c0_34, %c0_35] : memref<2x32x64xbf16, #tpu.memory_space<vmem>>, vector<1x32x64xbf16>
    %30 = vector.shape_cast %29 : vector<1x32x64xbf16> to vector<32x64xbf16>
    %c128_36 = arith.constant 128 : index
    %c64_37 = arith.constant 64 : index
    %31 = vector.load %arg5[%c128_36, %c64_37] : memref<288x128xbf16, #tpu.memory_space<vmem>>, vector<32x64xbf16>
    tpu.vector_store %arg5[%c128_36, %c64_37], %30 {strides = array<i32>} : memref<288x128xbf16, #tpu.memory_space<vmem>>, vector<32x64xbf16>,
    %c0_38 = arith.constant 0 : index
    %c0_39 = arith.constant 0 : index
    %c6_40 = arith.constant 6 : index
    %32 = vector.load %arg1[%c0_38, %c0_39, %c6_40] : memref<2x32x64xbf16, #tpu.memory_space<vmem>>, vector<1x32x58xbf16>
    %33 = vector.shape_cast %32 : vector<1x32x58xbf16> to vector<32x58xbf16>
    %c160 = arith.constant 160 : index
    %c0_41 = arith.constant 0 : index
    %34 = vector.load %arg5[%c160, %c0_41] : memref<288x128xbf16, #tpu.memory_space<vmem>>, vector<32x58xbf16>
    tpu.vector_store %arg5[%c160, %c0_41], %33 {strides = array<i32>} : memref<288x128xbf16, #tpu.memory_space<vmem>>, vector<32x58xbf16>,
    %c1_42 = arith.constant 1 : index
    %c0_43 = arith.constant 0 : index
    %c6_44 = arith.constant 6 : index
    %35 = vector.load %arg1[%c1_42, %c0_43, %c6_44] : memref<2x32x64xbf16, #tpu.memory_space<vmem>>, vector<1x32x58xbf16>
    %36 = vector.shape_cast %35 : vector<1x32x58xbf16> to vector<32x58xbf16>
    %c160_45 = arith.constant 160 : index
    %c64_46 = arith.constant 64 : index
    %37 = vector.load %arg5[%c160_45, %c64_46] : memref<288x128xbf16, #tpu.memory_space<vmem>>, vector<32x58xbf16>
    tpu.vector_store %arg5[%c160_45, %c64_46], %36 {strides = array<i32>} : memref<288x128xbf16, #tpu.memory_space<vmem>>, vector<32x58xbf16>,
    %c0_47 = arith.constant 0 : index
    %c0_48 = arith.constant 0 : index
    %c12_49 = arith.constant 12 : index
    %38 = vector.load %arg1[%c0_47, %c0_48, %c12_49] : memref<2x32x64xbf16, #tpu.memory_space<vmem>>, vector<1x32x52xbf16>
    %39 = vector.shape_cast %38 : vector<1x32x52xbf16> to vector<32x52xbf16>
    %c192 = arith.constant 192 : index
    %c0_50 = arith.constant 0 : index
    %40 = vector.load %arg5[%c192, %c0_50] : memref<288x128xbf16, #tpu.memory_space<vmem>>, vector<32x52xbf16>
    tpu.vector_store %arg5[%c192, %c0_50], %39 {strides = array<i32>} : memref<288x128xbf16, #tpu.memory_space<vmem>>, vector<32x52xbf16>,
    %c1_51 = arith.constant 1 : index
    %c0_52 = arith.constant 0 : index
    %c12_53 = arith.constant 12 : index
    %41 = vector.load %arg1[%c1_51, %c0_52, %c12_53] : memref<2x32x64xbf16, #tpu.memory_space<vmem>>, vector<1x32x52xbf16>
    %42 = vector.shape_cast %41 : vector<1x32x52xbf16> to vector<32x52xbf16>
    %c192_54 = arith.constant 192 : index
    %c64_55 = arith.constant 64 : index
    %43 = vector.load %arg5[%c192_54, %c64_55] : memref<288x128xbf16, #tpu.memory_space<vmem>>, vector<32x52xbf16>
    tpu.vector_store %arg5[%c192_54, %c64_55], %42 {strides = array<i32>} : memref<288x128xbf16, #tpu.memory_space<vmem>>, vector<32x52xbf16>,
    %c0_56 = arith.constant 0 : index
    %c0_57 = arith.constant 0 : index
    %c18_58 = arith.constant 18 : index
    %44 = vector.load %arg1[%c0_56, %c0_57, %c18_58] : memref<2x32x64xbf16, #tpu.memory_space<vmem>>, vector<1x32x46xbf16>
    %45 = vector.shape_cast %44 : vector<1x32x46xbf16> to vector<32x46xbf16>
    %c224 = arith.constant 224 : index
    %c0_59 = arith.constant 0 : index
    %46 = vector.load %arg5[%c224, %c0_59] : memref<288x128xbf16, #tpu.memory_space<vmem>>, vector<32x46xbf16>
    tpu.vector_store %arg5[%c224, %c0_59], %45 {strides = array<i32>} : memref<288x128xbf16, #tpu.memory_space<vmem>>, vector<32x46xbf16>,
    %c1_60 = arith.constant 1 : index
    %c0_61 = arith.constant 0 : index
    %c18_62 = arith.constant 18 : index
    %47 = vector.load %arg1[%c1_60, %c0_61, %c18_62] : memref<2x32x64xbf16, #tpu.memory_space<vmem>>, vector<1x32x46xbf16>
    %48 = vector.shape_cast %47 : vector<1x32x46xbf16> to vector<32x46xbf16>
    %c224_63 = arith.constant 224 : index
    %c64_64 = arith.constant 64 : index
    %49 = vector.load %arg5[%c224_63, %c64_64] : memref<288x128xbf16, #tpu.memory_space<vmem>>, vector<32x46xbf16>
    tpu.vector_store %arg5[%c224_63, %c64_64], %48 {strides = array<i32>} : memref<288x128xbf16, #tpu.memory_space<vmem>>, vector<32x46xbf16>,
    %c0_65 = arith.constant 0 : index
    %c0_66 = arith.constant 0 : index
    %c24_67 = arith.constant 24 : index
    %50 = vector.load %arg1[%c0_65, %c0_66, %c24_67] : memref<2x32x64xbf16, #tpu.memory_space<vmem>>, vector<1x32x40xbf16>
    %51 = vector.shape_cast %50 : vector<1x32x40xbf16> to vector<32x40xbf16>
    %c256 = arith.constant 256 : index
    %c0_68 = arith.constant 0 : index
    %52 = vector.load %arg5[%c256, %c0_68] : memref<288x128xbf16, #tpu.memory_space<vmem>>, vector<32x40xbf16>
    tpu.vector_store %arg5[%c256, %c0_68], %51 {strides = array<i32>} : memref<288x128xbf16, #tpu.memory_space<vmem>>, vector<32x40xbf16>,
    %c1_69 = arith.constant 1 : index
    %c0_70 = arith.constant 0 : index
    %c24_71 = arith.constant 24 : index
    %53 = vector.load %arg1[%c1_69, %c0_70, %c24_71] : memref<2x32x64xbf16, #tpu.memory_space<vmem>>, vector<1x32x40xbf16>
    %54 = vector.shape_cast %53 : vector<1x32x40xbf16> to vector<32x40xbf16>
    %c256_72 = arith.constant 256 : index
    %c64_73 = arith.constant 64 : index
    %55 = vector.load %arg5[%c256_72, %c64_73] : memref<288x128xbf16, #tpu.memory_space<vmem>>, vector<32x40xbf16>
    tpu.vector_store %arg5[%c256_72, %c64_73], %54 {strides = array<i32>} : memref<288x128xbf16, #tpu.memory_space<vmem>>, vector<32x40xbf16>,
    %c0_74 = arith.constant 0 : index
    %c0_75 = arith.constant 0 : index
    %56 = vector.load %arg2[%c0_74, %c0_75] : memref<192x288xbf16, #tpu.memory_space<vmem>>, vector<192x288xbf16>
    %c0_76 = arith.constant 0 : index
    %c0_77 = arith.constant 0 : index
    %57 = vector.load %arg5[%c0_76, %c0_77] : memref<288x128xbf16, #tpu.memory_space<vmem>>, vector<288x128xbf16>
    %cst_78 = arith.constant dense<0.000000e+00> : vector<192x128xf32>
    %58 = tpu.matmul %56, %57, %cst_78 {dimension_numbers = #tpu.dot_dimension_numbers<[1], [0], [0], [1], [0, 0, 1, 1], [], []>} : vector<192x288xbf16>, vector<288x128xbf16>, vector<192x128xf32> -> vector<192x128xf32>
    %c0_79 = arith.constant 0 : index
    %c0_80 = arith.constant 0 : index
    %59 = vector.load %arg3[%c0_79, %c0_80] : memref<192x1xf32, #tpu.memory_space<vmem>>, vector<192x1xf32>
    %c0_i32 = arith.constant 0 : i32
    %60 = arith.cmpi eq, %arg0, %c0_i32 : i32
    %c0_i32_81 = arith.constant 0 : i32
    %61 = arith.cmpi slt, %arg0, %c0_i32_81 : i32
    %62 = arith.extui %61 : i1 to i32
    %c0_i32_82 = arith.constant 0 : i32
    %63 = arith.cmpi ne, %62, %c0_i32_82 : i32
    scf.if %63 {
      %66 = vector.broadcast %59 : vector<192x1xf32> to vector<192x128xf32>
      %67 = arith.addf %58, %66 : vector<192x128xf32>
      %cst_84 = arith.constant 0.000000e+00 : f32
      %68 = vector.broadcast %cst_84 : f32 to vector<192x128xf32>
      %69 = arith.maximumf %67, %68 : vector<192x128xf32>
      %c0_85 = arith.constant 0 : index
      %c0_86 = arith.constant 0 : index
      %70 = vector.load %arg4[%c0_85, %c0_86] : memref<192x128xf32, #tpu.memory_space<vmem>>, vector<192x128xf32>
      tpu.vector_store %arg4[%c0_85, %c0_86], %69 {strides = array<i32>} : memref<192x128xf32, #tpu.memory_space<vmem>>, vector<192x128xf32>,
    } else {
    }
    %64 = arith.extui %60 : i1 to i32
    %c0_i32_83 = arith.constant 0 : i32
    %65 = arith.cmpi ne, %64, %c0_i32_83 : i32
    scf.if %65 {
      %66 = vector.extract_strided_slice %58 {offsets = [0, 0], sizes = [160, 128], strides = [1, 1]} : vector<192x128xf32> to vector<160x128xf32>
      %67 = vector.extract_strided_slice %59 {offsets = [0, 0], sizes = [160, 1], strides = [1, 1]} : vector<192x1xf32> to vector<160x1xf32>
      %68 = vector.broadcast %67 : vector<160x1xf32> to vector<160x128xf32>
      %69 = arith.addf %66, %68 : vector<160x128xf32>
      %cst_84 = arith.constant 0.000000e+00 : f32
      %70 = vector.broadcast %cst_84 : f32 to vector<160x128xf32>
      %71 = arith.maximumf %69, %70 : vector<160x128xf32>
      %c0_85 = arith.constant 0 : index
      %c0_86 = arith.constant 0 : index
      %72 = vector.load %arg4[%c0_85, %c0_86] : memref<192x128xf32, #tpu.memory_space<vmem>>, vector<160x128xf32>
      tpu.vector_store %arg4[%c0_85, %c0_86], %71 {strides = array<i32>} : memref<192x128xf32, #tpu.memory_space<vmem>>, vector<160x128xf32>,
      %73 = vector.extract_strided_slice %58 {offsets = [160, 0], sizes = [32, 128], strides = [1, 1]} : vector<192x128xf32> to vector<32x128xf32>
      %74 = vector.extract_strided_slice %73 {offsets = [0, 0], sizes = [32, 64], strides = [1, 1]} : vector<32x128xf32> to vector<32x64xf32>
      %cst_87 = arith.constant dense<0.000000e+00> : vector<32xf32>
      %75 = vector.multi_reduction <add>, %74, %cst_87 [1] : vector<32x64xf32> to vector<32xf32>
      %76 = vector.shape_cast %75 : vector<32xf32> to vector<32x1xf32>
      %cst_88 = arith.constant 6.400000e+01 : f32
      %77 = vector.broadcast %cst_88 : f32 to vector<32x1xf32>
      %78 = arith.divf %76, %77 : vector<32x1xf32>
      %79 = vector.shape_cast %78 : vector<32x1xf32> to vector<32x1xf32>
      %80 = vector.broadcast %79 : vector<32x1xf32> to vector<32x64xf32>
      %81 = vector.extract_strided_slice %73 {offsets = [0, 64], sizes = [32, 64], strides = [1, 1]} : vector<32x128xf32> to vector<32x64xf32>
      %cst_89 = arith.constant dense<0.000000e+00> : vector<32xf32>
      %82 = vector.multi_reduction <add>, %81, %cst_89 [1] : vector<32x64xf32> to vector<32xf32>
      %83 = vector.shape_cast %82 : vector<32xf32> to vector<32x1xf32>
      %cst_90 = arith.constant 6.400000e+01 : f32
      %84 = vector.broadcast %cst_90 : f32 to vector<32x1xf32>
      %85 = arith.divf %83, %84 : vector<32x1xf32>
      %86 = vector.shape_cast %85 : vector<32x1xf32> to vector<32x1xf32>
      %87 = vector.broadcast %86 : vector<32x1xf32> to vector<32x64xf32>
      %88 = tpu.concatenate %80, %87 in 1 : vector<32x64xf32>, vector<32x64xf32> -> vector<32x128xf32>
      %89 = vector.extract_strided_slice %59 {offsets = [160, 0], sizes = [32, 1], strides = [1, 1]} : vector<192x1xf32> to vector<32x1xf32>
      %90 = vector.broadcast %89 : vector<32x1xf32> to vector<32x128xf32>
      %91 = arith.addf %88, %90 : vector<32x128xf32>
      %cst_91 = arith.constant 0.000000e+00 : f32
      %92 = vector.broadcast %cst_91 : f32 to vector<32x128xf32>
      %93 = arith.maximumf %91, %92 : vector<32x128xf32>
      %c160_92 = arith.constant 160 : index
      %c0_93 = arith.constant 0 : index
      %94 = vector.load %arg4[%c160_92, %c0_93] : memref<192x128xf32, #tpu.memory_space<vmem>>, vector<32x128xf32>
      tpu.vector_store %arg4[%c160_92, %c0_93], %93 {strides = array<i32>} : memref<192x128xf32, #tpu.memory_space<vmem>>, vector<32x128xf32>,
    } else {
    }
    return
  }
  func.func @transform_0(%arg0: i32) -> (i32, i32, i32) {
    %c0_i32 = arith.constant 0 : i32
    %c0_i32_0 = arith.constant 0 : i32
    %c0_i32_1 = arith.constant 0 : i32
    %c0_i32_2 = arith.constant 0 : i32
    return %c0_i32, %c0_i32_0, %c0_i32_1 : i32, i32, i32
  }
  func.func @transform_1(%arg0: i32) -> (i32, i32) {
    %c0_i32 = arith.constant 0 : i32
    %c0_i32_0 = arith.constant 0 : i32
    return %arg0, %c0_i32 : i32, i32
  }
  func.func @transform_2(%arg0: i32) -> (i32, i32) {
    %c0_i32 = arith.constant 0 : i32
    %c0_i32_0 = arith.constant 0 : i32
    return %arg0, %c0_i32 : i32, i32
  }
  func.func @transform_3(%arg0: i32) -> (i32, i32) {
    %c0_i32 = arith.constant 0 : i32
    %c0_i32_0 = arith.constant 0 : i32
    return %arg0, %c0_i32 : i32, i32
  }
}

</mosaic_0001>

<bundles_post_ra>
// kernel: _aspp1d_forward_impl.1
= control target key start
LH: loop header
LB: loop body
LE: loop exit
PB: predicated region body
PF: predicated region fallthrough
CT: control target
= control target key end

     0   :  { %s1942_s16 = smov 40   ;;  %s1943_s17 = smov 104   ;;  %v1950_v33 = vmov 0   ;;  %vm456_vm0 = vcmask 322560   ;;  %vm481_vm1 = vcmask 847360   ;;  %vm222_vm2 = vcmask 519216   ;;  %s2814_s0 = inlined_call_operand.vmem [shape: bf16[2,32,64], index: 0, kind: input, shape index: {}]   ;;  %s2815_s1 = inlined_call_operand.vmem [shape: bf16[192,288], index: 1, kind: input, shape index: {}]   ;;  %s2816_s2 = inlined_call_operand.vmem [shape: f32[192,1], index: 2, kind: input, shape index: {}]   ;;  %s2817_s3 = inlined_call_operand.vmem [shape: f32[192,128], index: 3, kind: output, shape index: {}]  }
   0x1   :  { %v1616_v0 = vld [vmem:[%s2814_s0 + $0x18] sm:$0xf]  ;;  %v438_v1 = vld [vmem:[%s2814_s0 + $0x8] sm:$0xf]  ;;  %v436_v2 = vld [vmem:[%s2814_s0] sm:$0xf]  ;;  %1938 = vset.pattern.permute.xlu0 %v1950_v33  ;;  %1939 = vset.pattern.permute.xlu1 %v1950_v33 }
   0x2   :  { %473 = vrot.lane.b32.xlu1 %v1616_v0, %s1942_s16  ;;  %448 = vrot.lane.b32.xlu0 %v438_v1, %s1943_s17  ;;  %v1617_v3 = vld [vmem:[%s2814_s0 + $0x1c] sm:$0xf]  ;;  %v439_v4 = vld [vmem:[%s2814_s0 + $0xc] sm:$0xf]  ;;  %s1944_s5 = smov 6   ;;  %s1945_s10 = smov 70  }
   0x3   :  { %444 = vrot.lane.b32.xlu2 %v436_v2, %s1943_s17  ;;  %v437_v5 = vld [vmem:[%s2814_s0 + $0x4] sm:$0xf]  ;;  %v1615_v6 = vld [vmem:[%s2814_s0 + $0x14] sm:$0xf]  ;;  %v1614_v7 = vld [vmem:[%s2814_s0 + $0x10] sm:$0xf] }
   0x4   :  { %v204_v8 = vld [vmem:[%s2814_s0 + $0x8] sm:$0xf]  ;;  %v1596_v9 = vld [vmem:[%s2814_s0 + $0x18] sm:$0xf]  ;;  %v205_v10 = vld [vmem:[%s2814_s0 + $0xc] sm:$0xf]  ;;  %1937 = vset.pattern.permute.xlu2 %v1950_v33 }
   0x5   :  { %v1597_v11 = vld [vmem:[%s2814_s0 + $0x1c] sm:$0xf]  ;;  %v203_v12 = vld [vmem:[%s2814_s0 + $0x4] sm:$0xf]  ;;  %v202_v13 = vld [vmem:[%s2814_s0] sm:$0xf] }
   0x6   :  { %v1594_v14 = vld [vmem:[%s2814_s0 + $0x10] sm:$0xf]  ;;  %v1595_v15 = vld [vmem:[%s2814_s0 + $0x14] sm:$0xf]  ;;  %v154_v16 = vld [vmem:[%s2814_s0 + $0x8] sm:$0xf] }
   0x7   :  { %s1946_s23 = smov 12   ;;  %v155_v17 = vld [vmem:[%s2814_s0 + $0xc] sm:$0xf]  ;;  %v1592_v18 = vld [vmem:[%s2814_s0 + $0x18] sm:$0xf]  ;;  %s1947_s30 = smov 76  }
   0x8   :  { %v1593_v19 = vld [vmem:[%s2814_s0 + $0x1c] sm:$0xf]  ;;  %v152_v20 = vld [vmem:[%s2814_s0] sm:$0xf]  ;;  %v1590_v21 = vld [vmem:[%s2814_s0 + $0x10] sm:$0xf] }
   0x9   :  { %v153_v22 = vld [vmem:[%s2814_s0 + $0x4] sm:$0xf]  ;;  %v1591_v23 = vld [vmem:[%s2814_s0 + $0x14] sm:$0xf]  ;;  %v105_v24 = vld [vmem:[%s2814_s0 + $0xc] sm:$0xf] }
   0xa   :  { %475 = vrot.lane.b32.xlu1 %v1617_v3, %s1942_s16  ;;  %450 = vrot.lane.b32.xlu0 %v439_v4, %s1943_s17  ;;  %v104_v25 = vld [vmem:[%s2814_s0 + $0x8] sm:$0xf]  ;;  %v1588_v26 = vld [vmem:[%s2814_s0 + $0x18] sm:$0xf]  ;;  %s1949_s19 = smov 82   ;;  %vm172_vm3 = vcmask 519264  }
   0xb   :  { %446 = vrot.lane.b32.xlu2 %v437_v5, %s1943_s17  ;;  %v1589_v27 = vld [vmem:[%s2814_s0 + $0x1c] sm:$0xf]  ;;  %v102_v28 = vld [vmem:[%s2814_s0] sm:$0xf]  ;;  %v103_v29 = vld [vmem:[%s2814_s0 + $0x4] sm:$0xf] }
   0xc   :  { %v1586_v30 = vld [vmem:[%s2814_s0 + $0x10] sm:$0xf]  ;;  %v1587_v31 = vld [vmem:[%s2814_s0 + $0x14] sm:$0xf]  ;;  %v53_v32 = vld [vmem:[%s2814_s0 + $0x8] sm:$0xf] }
   0xd   :  { %49 = vst [vmem:[#allocation2 + $0x88] sm:$0xf] %v1950_v33  ;;  %v1584_v34 = vld [vmem:[%s2814_s0 + $0x18] sm:$0xf]  ;;  %v54_v35 = vld [vmem:[%s2814_s0 + $0xc] sm:$0xf] }
   0xe   :  { %15 = vst [vmem:[#allocation2] sm:$0xf] %v1950_v33  ;;  %v1585_v36 = vld [vmem:[%s2814_s0 + $0x1c] sm:$0xf]  ;;  %v52_v37 = vld [vmem:[%s2814_s0 + $0x4] sm:$0xf] }
   0xf   :  { %16 = vst [vmem:[#allocation2 + $0x4] sm:$0xf] %v1950_v33  ;;  %v51_v38 = vld [vmem:[%s2814_s0] sm:$0xf]  ;;  %v1582_v40 = vld [vmem:[%s2814_s0 + $0x10] sm:$0xf] }
  0x10   :  { %17 = vst [vmem:[#allocation2 + $0x8] sm:$0xf] %v1950_v33  ;;  %v388_v41 = vld [vmem:[%s2814_s0 + $0x8] sm:$0xf]  ;;  %v1583_v42 = vld [vmem:[%s2814_s0 + $0x14] sm:$0xf] }
  0x11   :  { %18 = vst [vmem:[#allocation2 + $0xc] sm:$0xf] %v1950_v33  ;;  %v389_v44 = vld [vmem:[%s2814_s0 + $0xc] sm:$0xf]  ;;  %v1613_v45 = vld [vmem:[%s2814_s0 + $0x1c] sm:$0xf] }
  0x12   :  { %471 = vrot.lane.b32.xlu1 %v1615_v6, %s1942_s16  ;;  %469 = vrot.lane.b32.xlu0 %v1614_v7, %s1942_s16  ;;  %s1948_s16 = smov 18   ;;  %19 = vst [vmem:[#allocation2 + $0x10] sm:$0xf] %v1950_v33  ;;  %v1612_v46 = vld [vmem:[%s2814_s0 + $0x18] sm:$0xf]  ;;  %vm247_vm4 = vcmask 1044016  }
  0x13   :  { %214 = vrot.lane.b32.xlu2 %v204_v8, %s1944_s5  ;;  %20 = vst [vmem:[#allocation2 + $0x14] sm:$0xf] %v1950_v33  ;;  %v386_v48 = vld [vmem:[%s2814_s0] sm:$0xf]  ;;  %v1610_v51 = vld [vmem:[%s2814_s0 + $0x10] sm:$0xf] }
  0x14   :  { %21 = vst [vmem:[#allocation2 + $0x18] sm:$0xf] %v1950_v33  ;;  %v387_v52 = vld [vmem:[%s2814_s0 + $0x4] sm:$0xf]  ;;  %v1611_v54 = vld [vmem:[%s2814_s0 + $0x14] sm:$0xf] }
  0x15   :  { %22 = vst [vmem:[#allocation2 + $0x1c] sm:$0xf] %v1950_v33  ;;  %v339_v57 = vld [vmem:[%s2814_s0 + $0xc] sm:$0xf]  ;;  %v338_v58 = vld [vmem:[%s2814_s0 + $0x8] sm:$0xf] }
  0x16   :  { %23 = vst [vmem:[#allocation2 + $0x20] sm:$0xf] %v1950_v33  ;;  %v1608_v60 = vld [vmem:[%s2814_s0 + $0x18] sm:$0xf]  ;;  %v336_v0 = vld [vmem:[%s2814_s0] sm:$0xf] }
  0x17   :  { %24 = vst [vmem:[#allocation2 + $0x24] sm:$0xf] %v1950_v33  ;;  %v1609_v1 = vld [vmem:[%s2814_s0 + $0x1c] sm:$0xf]  ;;  %v337_v3 = vld [vmem:[%s2814_s0 + $0x4] sm:$0xf] }
  0x18   :  { %25 = vst [vmem:[#allocation2 + $0x28] sm:$0xf] %v1950_v33  ;;  %v1628_v6 = vld [vmem:[%s2815_s1 + $0x8] sm:$0xf]  ;;  %v1848_v7 = vld [vmem:[%s2815_s1 + $0x10] sm:$0xf0] }
  0x19   :  { %26 = vst [vmem:[#allocation2 + $0x2c] sm:$0xf] %v1950_v33  ;;  %vm858_vm5 = vcmask 261120   ;;  %s1957_s9 = smov 122   ;;  %s1958_s14 = smov 58   ;;  %vm197_vm6 = vcmask 1044064  }
  0x1a   :  { %239 = vrot.lane.b32.xlu1 %v1596_v9, %s1945_s10  ;;  %216 = vrot.lane.b32.xlu0 %v205_v10, %s1944_s5  ;;  %27 = vst [vmem:[#allocation2 + $0x30] sm:$0xf] %v1950_v33  ;;  %v1607_v9 = vld [vmem:[%s2814_s0 + $0x14] sm:$0xf]  ;;  %v1606_v10 = vld [vmem:[%s2814_s0 + $0x10] sm:$0xf] }
  0x1b   :  { %241 = vrot.lane.b32.xlu2 %v1597_v11, %s1945_s10  ;;  %28 = vst [vmem:[#allocation2 + $0x34] sm:$0xf] %v1950_v33  ;;  %v1629_v11 = vor.u32 %v1848_v7, %v1628_v6  ;;  %vm122_vm7 = vcmask 519312   ;;  %s1959_s4 = smov 64   ;;  %vm71_vm8 = vcmask 519360   ;;  %vm147_vm9 = vcmask 1044112  }
  0x1c   :  { %29 = vst [vmem:[#allocation2 + $0x38] sm:$0xf] %v1950_v33  ;;  %vm406_vm10 = vcmask 371712   ;;  %vm97_vm11 = vcmask 1044160   ;;  %vm431_vm12 = vcmask 896512   ;;  %vm356_vm13 = vcmask 420864  }
  0x1d   :  { %30 = vst [vmem:[#allocation2 + $0x3c] sm:$0xf] %v1950_v33  ;;  %vm306_vm14 = vcmask 470016   ;;  %vm381_vm15 = vcmask 945664  }
  0x1e   :  { %31 = vst [vmem:[#allocation2 + $0x40] sm:$0xf] %v1950_v33 }
  0x1f   :  { %32 = vst [vmem:[#allocation2 + $0x44] sm:$0xf] %v1950_v33 }
  0x20   :  { %33 = vst [vmem:[#allocation2 + $0x48] sm:$0xf] %v1950_v33 }
  0x21   :  { %34 = vst [vmem:[#allocation2 + $0x4c] sm:$0xf] %v1950_v33 }
  0x22   :  { %212 = vrot.lane.b32.xlu1 %v203_v12, %s1944_s5  ;;  %210 = vrot.lane.b32.xlu0 %v202_v13, %s1944_s5  ;;  %s1951_s5 = smov 24   ;;  %35 = vst [vmem:[#allocation2 + $0x50] sm:$0xf] %v1950_v33  ;;  %v288_v13 = vld [vmem:[%s2814_s0 + $0x8] sm:$0xf] }
  0x23   :  { %235 = vrot.lane.b32.xlu2 %v1594_v14, %s1945_s10  ;;  %36 = vst [vmem:[#allocation2 + $0x54] sm:$0xf] %v1950_v33 }
  0x24   :  { %37 = vst [vmem:[#allocation2 + $0x58] sm:$0xf] %v1950_v33 }
  0x25   :  { %38 = vst [vmem:[#allocation2 + $0x5c] sm:$0xf] %v1950_v33 }
  0x26   :  { %39 = vst [vmem:[#allocation2 + $0x60] sm:$0xf] %v1950_v33 }
  0x27   :  { %40 = vst [vmem:[#allocation2 + $0x64] sm:$0xf] %v1950_v33 }
  0x28   :  { %41 = vst [vmem:[#allocation2 + $0x68] sm:$0xf] %v1950_v33 }
  0x29   :  { %42 = vst [vmem:[#allocation2 + $0x6c] sm:$0xf] %v1950_v33 }
  0x2a   :  { %237 = vrot.lane.b32.xlu0 %v1595_v15, %s1945_s10  ;;  %164 = vrot.lane.b32.xlu1 %v154_v16, %s1946_s23  ;;  %s1952_s10 = smov 88   ;;  %43 = vst [vmem:[#allocation2 + $0x70] sm:$0xf] %v1950_v33 }
  0x2b   :  { %166 = vrot.lane.b32.xlu2 %v155_v17, %s1946_s23  ;;  %44 = vst [vmem:[#allocation2 + $0x74] sm:$0xf] %v1950_v33  ;;  %v1604_v17 = vld [vmem:[%s2814_s0 + $0x18] sm:$0xf] }
  0x2c   :  { %45 = vst [vmem:[#allocation2 + $0x78] sm:$0xf] %v1950_v33 }
  0x2d   :  { %46 = vst [vmem:[#allocation2 + $0x7c] sm:$0xf] %v1950_v33 }
  0x2e   :  { %47 = vst [vmem:[#allocation2 + $0x80] sm:$0xf] %v1950_v33 }
  0x2f   :  { %48 = vst [vmem:[#allocation2 + $0x84] sm:$0xf] %v1950_v33 }
  0x30   :  { %50 = vst [vmem:[#allocation2 + $0x8c] sm:$0xf] %v1950_v33  ;;  %v1600_v33 = vld [vmem:[%s2814_s0 + $0x18] sm:$0xf] }
  0x32   :  { %189 = vrot.lane.b32.xlu0 %v1592_v18, %s1947_s30  ;;  %191 = vrot.lane.b32.xlu1 %v1593_v19, %s1947_s30  ;;  %v289_v18 = vld [vmem:[%s2814_s0 + $0xc] sm:$0xf] }
  0x33   :  { %160 = vrot.lane.b32.xlu2 %v152_v20, %s1946_s23  ;;  %v1605_v20 = vld [vmem:[%s2814_s0 + $0x1c] sm:$0xf] }
  0x3a   :  { %185 = vrot.lane.b32.xlu1 %v1590_v21, %s1947_s30  ;;  %162 = vrot.lane.b32.xlu0 %v153_v22, %s1946_s23  ;;  %s1953_s23 = smov 110  }
  0x3b   :  { %187 = vrot.lane.b32.xlu2 %v1591_v23, %s1947_s30  ;;  %s1954_s30 = smov 46   ;;  %v1640_v23 = vld [vmem:[%s2815_s1 + $0x20] sm:$0xf] }
  0x42   :  { %116 = vrot.lane.b32.xlu1 %v105_v24, %s1948_s16  ;;  %114 = vrot.lane.b32.xlu0 %v104_v25, %s1948_s16  ;;  %v1851_v24 = vld [vmem:[%s2815_s1 + $0x28] sm:$0xf0]  ;;  %v287_v25 = vld [vmem:[%s2814_s0 + $0x4] sm:$0xf] }
  0x43   :  { %139 = vrot.lane.b32.xlu2 %v1588_v26, %s1949_s19  ;;  %v286_v26 = vld [vmem:[%s2814_s0] sm:$0xf] }
  0x4a   :  { %141 = vrot.lane.b32.xlu0 %v1589_v27, %s1949_s19  ;;  %110 = vrot.lane.b32.xlu1 %v102_v28, %s1948_s16  ;;  %v1641_v27 = vor.u32 %v1851_v24, %v1640_v23  ;;  %v1700_v24 = vld [vmem:[%s2815_s1 + $0x98] sm:$0xf] }
  0x4b   :  { %112 = vrot.lane.b32.xlu2 %v103_v29, %s1948_s16  ;;  %s1955_s16 = smov 116   ;;  %v1602_v29 = vld [vmem:[%s2814_s0 + $0x10] sm:$0xf] }
  0x52   :  { %135 = vrot.lane.b32.xlu0 %v1586_v30, %s1949_s19  ;;  %137 = vrot.lane.b32.xlu1 %v1587_v31, %s1949_s19  ;;  %s1956_s19 = smov 52  }
  0x53   :  { %63 = vrot.lane.b32.xlu2 %v53_v32, %s1951_s5 }
  0x5a   :  { %89 = vrot.lane.b32.xlu1 %v1584_v34, %s1952_s10  ;;  %65 = vrot.lane.b32.xlu0 %v54_v35, %s1951_s5  ;;  %v1603_v34 = vld [vmem:[%s2814_s0 + $0x14] sm:$0xf] }
  0x5b   :  { %91 = vrot.lane.b32.xlu2 %v1585_v36, %s1952_s10  ;;  %v1601_v36 = vld [vmem:[%s2814_s0 + $0x1c] sm:$0xf] }
  0x5d   :  { %v445_v39 = vpop.permute.xlu2 %444 }
  0x5e   :  { %457 = vst.msk [vmem:[#allocation2 + $0x80] sm:$0xf] %vm456_vm0, %v445_v39  ;;  %v1652_v39 = vld [vmem:[%s2815_s1 + $0x38] sm:$0xf] }
  0x62   :  { %61 = vrot.lane.b32.xlu1 %v52_v37, %s1951_s5  ;;  %59 = vrot.lane.b32.xlu0 %v51_v38, %s1951_s5 }
  0x63   :  { %85 = vrot.lane.b32.xlu2 %v1582_v40, %s1952_s10  ;;  %v1854_v40 = vld [vmem:[%s2815_s1 + $0x40] sm:$0xf0] }
  0x65   :  { %v447_v43 = vpop.permute.xlu2 %446 }
  0x66   :  { %458 = vst.msk [vmem:[#allocation2 + $0x84] sm:$0xf] %vm456_vm0, %v447_v43  ;;  %v1598_v43 = vld [vmem:[%s2814_s0 + $0x10] sm:$0xf] }
  0x6a   :  { %398 = vrot.lane.b32.xlu1 %v388_v41, %s1953_s23  ;;  %87 = vrot.lane.b32.xlu0 %v1583_v42, %s1952_s10  ;;  %v1599_v42 = vld [vmem:[%s2814_s0 + $0x14] sm:$0xf] }
  0x6b   :  { %400 = vrot.lane.b32.xlu2 %v389_v44, %s1953_s23  ;;  %v1653_v44 = vor.u32 %v1854_v40, %v1652_v39  ;;  %v1712_v39 = vld [vmem:[%s2815_s1 + $0xb0] sm:$0xf]  ;;  %v1869_v40 = vld [vmem:[%s2815_s1 + $0xb8] sm:$0xf0] }
  0x6d   :  { %v215_v47 = vpop.permute.xlu2 %214 }
  0x6e   :  { %225 = vst.msk [vmem:[#allocation2 + $0x38] sm:$0xf] %vm222_vm2, %v215_v47 }
  0x72   :  { %425 = vrot.lane.b32.xlu1 %v1613_v45, %s1954_s30  ;;  %423 = vrot.lane.b32.xlu0 %v1612_v46, %s1954_s30 }
  0x73   :  { %394 = vrot.lane.b32.xlu2 %v386_v48, %s1953_s23 }
  0x74   :  { %v474_v49 = vpop.permute.xlu1 %473  ;;  %v449_v50 = vpop.permute.xlu0 %448 }
  0x75   :  { %459 = vst.msk [vmem:[#allocation2 + $0x88] sm:$0xf] %vm456_vm0, %v449_v50  ;;  %v242_v53 = vpop.permute.xlu2 %241 }
  0x76   :  { %484 = vst.msk [vmem:[#allocation2 + $0x88] sm:$0xf] %vm481_vm1, %v474_v49 }
  0x7a   :  { %419 = vrot.lane.b32.xlu1 %v1610_v51, %s1954_s30  ;;  %396 = vrot.lane.b32.xlu0 %v387_v52, %s1953_s23  ;;  %v1664_v52 = vld [vmem:[%s2815_s1 + $0x50] sm:$0xf] }
  0x7b   :  { %421 = vrot.lane.b32.xlu2 %v1611_v54, %s1954_s30 }
  0x7c   :  { %v476_v55 = vpop.permute.xlu1 %475  ;;  %v451_v56 = vpop.permute.xlu0 %450 }
  0x7d   :  { %460 = vst.msk [vmem:[#allocation2 + $0x8c] sm:$0xf] %vm456_vm0, %v451_v56  ;;  %v236_v59 = vpop.permute.xlu2 %235  ;;  %vm256_vm0 = vcmask 519168  }
  0x7e   :  { %485 = vst.msk [vmem:[#allocation2 + $0x8c] sm:$0xf] %vm481_vm1, %v476_v55 }
  0x82   :  { %350 = vrot.lane.b32.xlu1 %v339_v57, %s1955_s16  ;;  %348 = vrot.lane.b32.xlu0 %v338_v58, %s1955_s16 }
  0x83   :  { %373 = vrot.lane.b32.xlu2 %v1608_v60, %s1956_s19 }
  0x84   :  { %v472_v61 = vpop.permute.xlu1 %471  ;;  %v470_v62 = vpop.permute.xlu0 %469 }
  0x85   :  { %483 = vst.msk [vmem:[#allocation2 + $0x84] sm:$0xf] %vm481_vm1, %v472_v61  ;;  %v2189_v63 = vld [vmem:[#allocation2 + $0x88] sm:$0xff]  ;;  %v167_v2 = vpop.permute.xlu2 %166 }
  0x86   :  { %482 = vst.msk [vmem:[#allocation2 + $0x80] sm:$0xf] %vm481_vm1, %v470_v62  ;;  %1039 = vmatpush.bf16.msra.mxu2 %v2189_v63  ;;  %v1676_v62 = vld [vmem:[%s2815_s1 + $0x68] sm:$0xf]  ;;  %vm281_vm1 = vcmask 1043968  }
  0x87   :  { %176 = vst.msk [vmem:[#allocation2 + $0x2c] sm:$0xf] %vm172_vm3, %v167_v2 }
  0x8a   :  { %344 = vrot.lane.b32.xlu1 %v336_v0, %s1955_s16  ;;  %375 = vrot.lane.b32.xlu0 %v1609_v1, %s1956_s19  ;;  %v1860_v0 = vld [vmem:[%s2815_s1 + $0x70] sm:$0xf0] }
  0x8b   :  { %346 = vrot.lane.b32.xlu2 %v337_v3, %s1955_s16  ;;  %v1677_v2 = vor.u32 %v1860_v0, %v1676_v62  ;;  %v1620_v62 = vld [vmem:[%s2815_s1] sm:$0xf]  ;;  %v1847_v0 = vld [vmem:[%s2815_s1 + $0x8] sm:$0xf0] }
  0x8c   :  { %v240_v4 = vpop.permute.xlu1 %239  ;;  %v217_v5 = vpop.permute.xlu0 %216 }
  0x8d   :  { %250 = vst.msk [vmem:[#allocation2 + $0x38] sm:$0xf] %vm247_vm4, %v240_v4  ;;  %v2212_v8 = vld [vmem:[#allocation2 + $0x80] sm:$0xff]  ;;  %v161_v12 = vpop.permute.xlu2 %160 }
  0x8e   :  { %226 = vst.msk [vmem:[#allocation2 + $0x3c] sm:$0xf] %vm222_vm2, %v217_v5  ;;  %1040 = vmatpush.bf16.msra.mxu2 %v2212_v8 }
  0x8f   :  { %251 = vst.msk [vmem:[#allocation2 + $0x3c] sm:$0xf] %vm247_vm4, %v242_v53  ;;  %v1857_v53 = vld [vmem:[%s2815_s1 + $0x58] sm:$0xf0] }
  0x90   :  { %173 = vst.msk [vmem:[#allocation2 + $0x20] sm:$0xf] %vm172_vm3, %v161_v12  ;;  %v1665_v54 = vor.u32 %v1857_v53, %v1664_v52  ;;  %v1863_v12 = vld [vmem:[%s2815_s1 + $0x88] sm:$0xf0]  ;;  %v1108_v53 = vld [vmem:[%s2816_s2 + $0x30] sm:$0xff] }
  0x91   :  { %1834 = vmatmul.msk.bf16.vlgmr.msra.gmra.mxu2 %vm858_vm5, %v1629_v11  ;;  %v1688_v11 = vld [vmem:[%s2815_s1 + $0x80] sm:$0xf] }
  0x92   :  { %371 = vrot.lane.b32.xlu1 %v1607_v9, %s1956_s19  ;;  %369 = vrot.lane.b32.xlu0 %v1606_v10, %s1956_s19 }
  0x93   :  { %298 = vrot.lane.b32.xlu2 %v288_v13, %s1957_s9  ;;  %v1689_v13 = vor.u32 %v1863_v12, %v1688_v11  ;;  %v1736_v12 = vld [vmem:[%s2815_s1 + $0xe0] sm:$0xf] }
  0x94   :  { %v213_v14 = vpop.permute.xlu1 %212  ;;  %v211_v15 = vpop.permute.xlu0 %210 }
  0x95   :  { %224 = vst.msk [vmem:[#allocation2 + $0x34] sm:$0xf] %vm222_vm2, %v213_v14  ;;  %v188_v19 = vpop.permute.xlu2 %187 }
  0x96   :  { %223 = vst.msk [vmem:[#allocation2 + $0x30] sm:$0xf] %vm222_vm2, %v211_v15  ;;  %v1889_v16 = vld [vmem:[#allocation2 + $0x38] sm:$0xff]  ;;  %vm331_vm2 = vcmask 994816  }
  0x97   :  { %248 = vst.msk [vmem:[#allocation2 + $0x30] sm:$0xf] %vm247_vm4, %v236_v59  ;;  %895 = vmatpush.bf16.msra.mxu0 %v1889_v16  ;;  %1900 = vmatpush.bf16.msra.mxu3 %v1889_v16  ;;  %v1728_v15 = vld [vmem:[%s2815_s1 + $0xd8] sm:$0xf]  ;;  %v1874_v16 = vld [vmem:[%s2815_s1 + $0xe0] sm:$0xf0] }
  0x9a   :  { %323 = vrot.lane.b32.xlu1 %v1604_v17, %s1958_s14  ;;  %300 = vrot.lane.b32.xlu0 %v289_v18, %s1957_s9 }
  0x9b   :  { %325 = vrot.lane.b32.xlu2 %v1605_v20, %s1958_s14  ;;  %v1729_v20 = vor.u32 %v1874_v16, %v1728_v15  ;;  %v1117_v15 = vld [vmem:[%s2816_s2 + $0x78] sm:$0xff] }
  0x9c   :  { %v238_v21 = vpop.permute.xlu0 %237  ;;  %v165_v22 = vpop.permute.xlu1 %164 }
  0x9d   :  { %249 = vst.msk [vmem:[#allocation2 + $0x34] sm:$0xf] %vm247_vm4, %v238_v21  ;;  %v140_v28 = vpop.permute.xlu2 %139 }
  0x9e   :  { %175 = vst.msk [vmem:[#allocation2 + $0x28] sm:$0xf] %vm172_vm3, %v165_v22 }
  0xa1   :  { %1835 = vmatmul.msk.bf16.gmra.mxu2 %vm858_vm5, %v1641_v27 }
  0xa2   :  { %296 = vrot.lane.b32.xlu1 %v287_v25, %s1957_s9  ;;  %294 = vrot.lane.b32.xlu0 %v286_v26, %s1957_s9  ;;  %v1866_v25 = vld [vmem:[%s2815_s1 + $0xa0] sm:$0xf0] }
  0xa3   :  { %319 = vrot.lane.b32.xlu2 %v1602_v29, %s1958_s14  ;;  %v1701_v27 = vor.u32 %v1866_v25, %v1700_v24  ;;  %v1740_v29 = vld [vmem:[%s2815_s1 + $0xf0] sm:$0xf]  ;;  %v1846_v25 = vld [vmem:[%s2815_s1 + $0x4] sm:$0xf] }
  0xa4   :  { %v190_v30 = vpop.permute.xlu0 %189  ;;  %v192_v31 = vpop.permute.xlu1 %191  ;;  %v1888_v32 = vld [vmem:[#allocation2 + $0x30] sm:$0xff] }
  0xa5   :  { %200 = vst.msk [vmem:[#allocation2 + $0x28] sm:$0xf] %vm197_vm6, %v190_v30  ;;  %896 = vmatpush.bf16.msra.mxu0 %v1888_v32  ;;  %1901 = vmatpush.bf16.msra.mxu3 %v1888_v32  ;;  %v113_v35 = vpop.permute.xlu2 %112  ;;  %v1877_v30 = vld [vmem:[%s2815_s1 + $0xf8] sm:$0xf0] }
  0xa6   :  { %201 = vst.msk [vmem:[#allocation2 + $0x2c] sm:$0xf] %vm197_vm6, %v192_v31 }
  0xa7   :  { %124 = vst.msk [vmem:[#allocation2 + $0x14] sm:$0xf] %vm122_vm7, %v113_v35 }
  0xaa   :  { %273 = vrot.lane.b32.xlu1 %v1600_v33, %s1959_s4  ;;  %321 = vrot.lane.b32.xlu0 %v1603_v34, %s1958_s14  ;;  %v1741_v34 = vor.u32 %v1877_v30, %v1740_v29  ;;  %v1748_v29 = vld [vmem:[%s2815_s1 + $0xf8] sm:$0xf]  ;;  %v1878_v30 = vld [vmem:[%s2815_s1 + $0x100] sm:$0xf0] }
  0xab   :  { %275 = vrot.lane.b32.xlu2 %v1601_v36, %s1959_s4  ;;  %v254_v36 = vld [vmem:[%s2814_s0 + $0x8] sm:$0xf] }
  0xac   :  { %v186_v37 = vpop.permute.xlu1 %185  ;;  %v163_v38 = vpop.permute.xlu0 %162  ;;  %259 = vst.msk [vmem:[#allocation2 + $0x48] sm:$0xf] %vm256_vm0, %v254_v36 }
  0xad   :  { %198 = vst.msk [vmem:[#allocation2 + $0x20] sm:$0xf] %vm197_vm6, %v186_v37  ;;  %v1887_v41 = vld [vmem:[#allocation2 + $0x28] sm:$0xff]  ;;  %v64_v45 = vpop.permute.xlu2 %63 }
  0xae   :  { %174 = vst.msk [vmem:[#allocation2 + $0x24] sm:$0xf] %vm172_vm3, %v163_v38  ;;  %897 = vmatpush.bf16.msra.mxu0 %v1887_v41  ;;  %1902 = vmatpush.bf16.msra.mxu3 %v1887_v41  ;;  %v255_v41 = vld [vmem:[%s2814_s0 + $0xc] sm:$0xf]  ;;  %vm1486_vm3 = vcmask 523264  }
  0xaf   :  { %199 = vst.msk [vmem:[#allocation2 + $0x24] sm:$0xf] %vm197_vm6, %v188_v19 }
  0xb0   :  { %74 = vst.msk [vmem:[#allocation2 + $0x8] sm:$0xf] %vm71_vm8, %v64_v45  ;;  %v253_v45 = vld [vmem:[%s2814_s0 + $0x4] sm:$0xf] }
  0xb1   :  { %1836 = vmatmul.msk.bf16.gmra.mxu2 %vm858_vm5, %v1653_v44  ;;  %260 = vst.msk [vmem:[#allocation2 + $0x4c] sm:$0xf] %vm256_vm0, %v255_v41 }
  0xb2   :  { %271 = vrot.lane.b32.xlu1 %v1599_v42, %s1959_s4  ;;  %269 = vrot.lane.b32.xlu0 %v1598_v43, %s1959_s4  ;;  %v1103_v42 = vld [vmem:[%s2816_s2 + $0x8] sm:$0xff]  ;;  %v1713_v43 = vor.u32 %v1869_v40, %v1712_v39  ;;  %258 = vst.msk [vmem:[#allocation2 + $0x44] sm:$0xf] %vm256_vm0, %v253_v45  ;;  %v1102_v39 = vld [vmem:[%s2816_s2] sm:$0xff] }
  0xb3   :  { %v1106_v40 = vld [vmem:[%s2816_s2 + $0x20] sm:$0xff]  ;;  %1328 = vperm.xlu2 %1937, %v1102_v39   ;;  %v1856_v45 = vld [vmem:[%s2815_s1 + $0x50] sm:$0xf0] }
  0xb4   :  { %v117_v46 = vpop.permute.xlu1 %116  ;;  %v115_v47 = vpop.permute.xlu0 %114 }
  0xb5   :  { %126 = vst.msk [vmem:[#allocation2 + $0x1c] sm:$0xf] %vm122_vm7, %v117_v46  ;;  %v92_v49 = vpop.permute.xlu2 %91  ;;  %v1752_v46 = vld [vmem:[%s2815_s1 + $0x108] sm:$0xf] }
  0xb6   :  { %125 = vst.msk [vmem:[#allocation2 + $0x18] sm:$0xf] %vm122_vm7, %v115_v47  ;;  %v1886_v48 = vld [vmem:[#allocation2 + $0x20] sm:$0xff]  ;;  %v1880_v47 = vld [vmem:[%s2815_s1 + $0x110] sm:$0xf0] }
  0xb7   :  { %150 = vst.msk [vmem:[#allocation2 + $0x18] sm:$0xf] %vm147_vm9, %v140_v28  ;;  %898 = vmatpush.bf16.msra.mxu0 %v1886_v48  ;;  %1903 = vmatpush.bf16.msra.mxu3 %v1886_v48  ;;  %v1753_v52 = vor.u32 %v1880_v47, %v1752_v46 }
  0xba   :  { %1333 = vperm.xlu0 %1938, %v1103_v42   ;;  %v1634_v42 = vld [vmem:[%s2815_s1 + $0x24] sm:$0xf0] }
  0xbc   :  { %v142_v50 = vpop.permute.xlu0 %141  ;;  %v111_v51 = vpop.permute.xlu1 %110 }
  0xbd   :  { %151 = vst.msk [vmem:[#allocation2 + $0x1c] sm:$0xf] %vm147_vm9, %v142_v50  ;;  %v86_v55 = vpop.permute.xlu2 %85  ;;  %v252_v50 = vld [vmem:[%s2814_s0] sm:$0xf] }
  0xbe   :  { %123 = vst.msk [vmem:[#allocation2 + $0x10] sm:$0xf] %vm122_vm7, %v111_v51 }
  0xbf   :  { %257 = vst.msk [vmem:[#allocation2 + $0x40] sm:$0xf] %vm256_vm0, %v252_v50  ;;  %v1105_v50 = vld [vmem:[%s2816_s2 + $0x18] sm:$0xff] }
  0xc0   :  { %1343 = vperm.xlu2 %1937, %v1105_v50  }
  0xc1   :  { %1837 = vmatmul.msk.bf16.gmra.mxu2 %vm858_vm5, %v1665_v54 }
  0xc2   :  { %1358 = vperm.xlu0 %1938, %v1108_v53   ;;  %v1646_v53 = vld [vmem:[%s2815_s1 + $0x3c] sm:$0xf0] }
  0xc4   :  { %v136_v56 = vpop.permute.xlu0 %135  ;;  %v138_v57 = vpop.permute.xlu1 %137  ;;  %v1885_v58 = vld [vmem:[#allocation2 + $0x18] sm:$0xff] }
  0xc5   :  { %148 = vst.msk [vmem:[#allocation2 + $0x10] sm:$0xf] %vm147_vm9, %v136_v56  ;;  %899 = vmatpush.bf16.msra.mxu0 %v1885_v58  ;;  %1904 = vmatpush.bf16.msra.mxu3 %v1885_v58  ;;  %v401_v59 = vpop.permute.xlu2 %400  ;;  %v1872_v58 = vld [vmem:[%s2815_s1 + $0xd0] sm:$0xf0] }
  0xc6   :  { %149 = vst.msk [vmem:[#allocation2 + $0x14] sm:$0xf] %vm147_vm9, %v138_v57  ;;  %v1724_v57 = vld [vmem:[%s2815_s1 + $0xc8] sm:$0xf] }
  0xc7   :  { %410 = vst.msk [vmem:[#allocation2 + $0x7c] sm:$0xf] %vm406_vm10, %v401_v59 }
  0xcc   :  { %v90_v60 = vpop.permute.xlu1 %89  ;;  %v66_v61 = vpop.permute.xlu0 %65 }
  0xcd   :  { %100 = vst.msk [vmem:[#allocation2 + $0x8] sm:$0xf] %vm97_vm11, %v90_v60  ;;  %v1884_v1 = vld [vmem:[#allocation2 + $0x10] sm:$0xff]  ;;  %v395_v3 = vpop.permute.xlu2 %394  ;;  %v1111_v60 = vld [vmem:[%s2816_s2 + $0x48] sm:$0xff] }
  0xce   :  { %75 = vst.msk [vmem:[#allocation2 + $0xc] sm:$0xf] %vm71_vm8, %v66_v61  ;;  %900 = vmatpush.bf16.msra.mxu0 %v1884_v1  ;;  %1905 = vmatpush.bf16.msra.mxu3 %v1884_v1  ;;  %v1725_v61 = vor.u32 %v1872_v58, %v1724_v57  ;;  %v1621_v1 = vor.u32 %v1847_v0, %v1620_v62  ;;  %v1859_v57 = vld [vmem:[%s2815_s1 + $0x68] sm:$0xf0]  ;;  %v1109_v62 = vld [vmem:[%s2816_s2 + $0x38] sm:$0xff] }
  0xcf   :  { %101 = vst.msk [vmem:[#allocation2 + $0xc] sm:$0xf] %vm97_vm11, %v92_v49  ;;  %1373 = vperm.xlu0 %1938, %v1111_v60   ;;  %v1107_v0 = vld [vmem:[%s2816_s2 + $0x28] sm:$0xff] }
  0xd0   :  { %407 = vst.msk [vmem:[#allocation2 + $0x70] sm:$0xf] %vm406_vm10, %v395_v3  ;;  %1353 = vperm.xlu2 %1937, %v1107_v0  }
  0xd1   :  { %1838 = vmatmul.msk.bf16.gmra.mxu2 %vm858_vm5, %v1677_v2 }
  0xd4   :  { %v62_v4 = vpop.permute.xlu1 %61  ;;  %v60_v5 = vpop.permute.xlu0 %59 }
  0xd5   :  { %73 = vst.msk [vmem:[#allocation2 + $0x4] sm:$0xf] %vm71_vm8, %v62_v4  ;;  %v422_v7 = vpop.permute.xlu2 %421 }
  0xd6   :  { %72 = vst.msk [vmem:[#allocation2] sm:$0xf] %vm71_vm8, %v60_v5  ;;  %v1883_v6 = vld [vmem:[#allocation2 + $0x8] sm:$0xff] }
  0xd7   :  { %98 = vst.msk [vmem:[#allocation2] sm:$0xf] %vm97_vm11, %v86_v55  ;;  %901 = vmatpush.bf16.msra.mxu0 %v1883_v6  ;;  %1906 = vmatpush.bf16.msra.mxu3 %v1883_v6  ;;  %v1114_v6 = vld [vmem:[%s2816_s2 + $0x60] sm:$0xff] }
  0xd8   :  { %1388 = vperm.xlu0 %1938, %v1114_v6   ;;  %v1881_v6 = vld [vmem:[%s2815_s1 + $0x118] sm:$0xf0] }
  0xdc   :  { %v399_v9 = vpop.permute.xlu1 %398  ;;  %v88_v10 = vpop.permute.xlu0 %87 }
  0xdd   :  { %409 = vst.msk [vmem:[#allocation2 + $0x78] sm:$0xf] %vm406_vm10, %v399_v9  ;;  %v374_v14 = vpop.permute.xlu2 %373  ;;  %v1850_v9 = vld [vmem:[%s2815_s1 + $0x20] sm:$0xf0] }
  0xde   :  { %99 = vst.msk [vmem:[#allocation2 + $0x4] sm:$0xf] %vm97_vm11, %v88_v10 }
  0xe0   :  { %1403 = vperm.xlu0 %1938, %v1117_v15   ;;  %v1110_v15 = vld [vmem:[%s2816_s2 + $0x40] sm:$0xff] }
  0xe1   :  { %1839 = vmatmul.msk.bf16.gmra.mxu2 %vm858_vm5, %v1689_v13  ;;  %v1875_v13 = vld [vmem:[%s2815_s1 + $0xe8] sm:$0xf0]  ;;  %1368 = vperm.xlu2 %1937, %v1110_v15  }
  0xe4   :  { %v426_v17 = vpop.permute.xlu1 %425  ;;  %v424_v18 = vpop.permute.xlu0 %423 }
  0xe5   :  { %435 = vst.msk [vmem:[#allocation2 + $0x7c] sm:$0xf] %vm431_vm12, %v426_v17  ;;  %v1882_v19 = vld [vmem:[#allocation2] sm:$0xff]  ;;  %v347_v21 = vpop.permute.xlu2 %346  ;;  %v1737_v17 = vor.u32 %v1875_v13, %v1736_v12 }
  0xe6   :  { %434 = vst.msk [vmem:[#allocation2 + $0x78] sm:$0xf] %vm431_vm12, %v424_v18  ;;  %902 = vmatpush.bf16.msra.mxu0 %v1882_v19  ;;  %1907 = vmatpush.bf16.msra.mxu3 %v1882_v19  ;;  %v1104_v18 = vld [vmem:[%s2816_s2 + $0x10] sm:$0xff] }
  0xe7   :  { %358 = vst.msk [vmem:[#allocation2 + $0x64] sm:$0xf] %vm356_vm13, %v347_v21  ;;  %1338 = vperm.xlu1 %1939, %v1104_v18   ;;  %v1858_v18 = vld [vmem:[%s2815_s1 + $0x64] sm:$0xf] }
  0xe9   :  { %948 = vmatmul.bf16.vlgmr.msra.gmra.mxu3 %v1729_v20  ;;  %903 = vmatmul.bf16.vlgmr.msra.gmra.mxu0 %v1621_v1 }
  0xec   :  { %v420_v22 = vpop.permute.xlu1 %419  ;;  %v397_v23 = vpop.permute.xlu0 %396 }
  0xed   :  { %432 = vst.msk [vmem:[#allocation2 + $0x70] sm:$0xf] %vm431_vm12, %v420_v22  ;;  %v1897_v26 = vld [vmem:[#allocation2 + $0x78] sm:$0xff]  ;;  %v299_v28 = vpop.permute.xlu2 %298 }
  0xee   :  { %408 = vst.msk [vmem:[#allocation2 + $0x74] sm:$0xf] %vm406_vm10, %v397_v23  ;;  %964 = vmatpush.bf16.msra.mxu1 %v1897_v26  ;;  %1908 = vmatpush.bf16.msrb.mxu3 %v1897_v26  ;;  %v1120_v23 = vld [vmem:[%s2816_s2 + $0x90] sm:$0xff] }
  0xef   :  { %433 = vst.msk [vmem:[#allocation2 + $0x74] sm:$0xf] %vm431_vm12, %v422_v7  ;;  %v1632_v7 = vld [vmem:[%s2815_s1 + $0x18] sm:$0xf]  ;;  %1418 = vperm.xlu0 %1938, %v1120_v23   ;;  %v1622_v26 = vld [vmem:[%s2815_s1 + $0xc] sm:$0xf0]  ;;  %1348 = vperm.xlu1 %1939, %v1106_v40  }
  0xf0   :  { %309 = vst.msk [vmem:[#allocation2 + $0x58] sm:$0xf] %vm306_vm14, %v299_v28  ;;  %v1633_v16 = vor.u32 %v1850_v9, %v1632_v7  ;;  %v1730_v28 = vld [vmem:[%s2815_s1 + $0xe4] sm:$0xf0]  ;;  %v1680_v7 = vld [vmem:[%s2815_s1 + $0x78] sm:$0xf] }
  0xf1   :  { %1840 = vmatmul.msk.bf16.gmra.mxu2 %vm858_vm5, %v1701_v27  ;;  %v1873_v27 = vld [vmem:[%s2815_s1 + $0xdc] sm:$0xf]  ;;  %v1862_v9 = vld [vmem:[%s2815_s1 + $0x80] sm:$0xf0] }
  0xf2   :  { %v1681_v13 = vor.u32 %v1862_v9, %v1680_v7 }
  0xf4   :  { %v351_v31 = vpop.permute.xlu1 %350  ;;  %v349_v32 = vpop.permute.xlu0 %348 }
  0xf5   :  { %360 = vst.msk [vmem:[#allocation2 + $0x6c] sm:$0xf] %vm356_vm13, %v351_v31  ;;  %v326_v35 = vpop.permute.xlu2 %325  ;;  %v1644_v31 = vld [vmem:[%s2815_s1 + $0x30] sm:$0xf] }
  0xf6   :  { %359 = vst.msk [vmem:[#allocation2 + $0x68] sm:$0xf] %vm356_vm13, %v349_v32  ;;  %v1896_v33 = vld [vmem:[#allocation2 + $0x70] sm:$0xff]  ;;  %v1853_v32 = vld [vmem:[%s2815_s1 + $0x38] sm:$0xf0] }
  0xf7   :  { %384 = vst.msk [vmem:[#allocation2 + $0x68] sm:$0xf] %vm381_vm15, %v374_v14  ;;  %965 = vmatpush.bf16.msra.mxu1 %v1896_v33  ;;  %1909 = vmatpush.bf16.msrb.mxu3 %v1896_v33 }
  0xf8   :  { %1363 = vperm.xlu1 %1939, %v1109_v62  }
  0xf9   :  { %953 = vmatmul.bf16.gmra.mxu3 %v1741_v34  ;;  %908 = vmatmul.bf16.gmra.mxu0 %v1633_v16  ;;  %v1625_v34 = vor.u32 %v1846_v25, %v1622_v26  ;;  %v1116_v26 = vld [vmem:[%s2816_s2 + $0x70] sm:$0xff] }
  0xfc   :  { %v345_v37 = vpop.permute.xlu1 %344  ;;  %v376_v38 = vpop.permute.xlu0 %375 }
  0xfd   :  { %357 = vst.msk [vmem:[#allocation2 + $0x60] sm:$0xf] %vm356_vm13, %v345_v37  ;;  %v320_v44 = vpop.permute.xlu2 %319  ;;  %v1749_v37 = vor.u32 %v1878_v30, %v1748_v29  ;;  %v1861_v29 = vld [vmem:[%s2815_s1 + $0x7c] sm:$0xf]  ;;  %v1682_v30 = vld [vmem:[%s2815_s1 + $0x84] sm:$0xf0] }
  0xfe   :  { %385 = vst.msk [vmem:[#allocation2 + $0x6c] sm:$0xf] %vm381_vm15, %v376_v38  ;;  %v1645_v38 = vor.u32 %v1853_v32, %v1644_v31  ;;  %v1704_v32 = vld [vmem:[%s2815_s1 + $0xa8] sm:$0xf] }
 0x101   :  { %1841 = vmatmul.msk.bf16.gmra.mxu2 %vm858_vm5, %v1713_v43  ;;  %v1876_v43 = vld [vmem:[%s2815_s1 + $0xf4] sm:$0xf] }
 0x104   :  { %v372_v48 = vpop.permute.xlu1 %371  ;;  %v370_v49 = vpop.permute.xlu0 %369 }
 0x105   :  { %383 = vst.msk [vmem:[#allocation2 + $0x64] sm:$0xf] %vm381_vm15, %v372_v48  ;;  %v1895_v51 = vld [vmem:[#allocation2 + $0x68] sm:$0xff]  ;;  %v276_v54 = vpop.permute.xlu2 %275 }
 0x106   :  { %382 = vst.msk [vmem:[#allocation2 + $0x60] sm:$0xf] %vm381_vm15, %v370_v49  ;;  %966 = vmatpush.bf16.msra.mxu1 %v1895_v51  ;;  %1910 = vmatpush.bf16.msrb.mxu3 %v1895_v51 }
 0x107   :  { %285 = vst.msk [vmem:[#allocation2 + $0x4c] sm:$0xf] %vm281_vm1, %v276_v54  ;;  %v1879_v54 = vld [vmem:[%s2815_s1 + $0x10c] sm:$0xf] }
 0x109   :  { %958 = vmatmul.bf16.gmra.mxu3 %v1753_v52  ;;  %913 = vmatmul.bf16.gmra.mxu0 %v1645_v38  ;;  %v1852_v52 = vld [vmem:[%s2815_s1 + $0x34] sm:$0xf] }
 0x10a   :  { %v1649_v58 = vor.u32 %v1852_v52, %v1646_v53 }
 0x10c   :  { %v324_v55 = vpop.permute.xlu1 %323  ;;  %v301_v56 = vpop.permute.xlu0 %300 }
 0x10d   :  { %334 = vst.msk [vmem:[#allocation2 + $0x58] sm:$0xf] %vm331_vm2, %v324_v55  ;;  %v1894_v59 = vld [vmem:[#allocation2 + $0x60] sm:$0xff]  ;;  %v1754_v55 = vld [vmem:[%s2815_s1 + $0x114] sm:$0xf0] }
 0x10e   :  { %310 = vst.msk [vmem:[#allocation2 + $0x5c] sm:$0xf] %vm306_vm14, %v301_v56  ;;  %967 = vmatpush.bf16.msra.mxu1 %v1894_v59  ;;  %1911 = vmatpush.bf16.msrb.mxu3 %v1894_v59  ;;  %v1668_v56 = vld [vmem:[%s2815_s1 + $0x60] sm:$0xf]  ;;  %v1757_v59 = vor.u32 %v1879_v54, %v1754_v55  ;;  %v1867_v55 = vld [vmem:[%s2815_s1 + $0xac] sm:$0xf] }
 0x10f   :  { %335 = vst.msk [vmem:[#allocation2 + $0x5c] sm:$0xf] %vm331_vm2, %v326_v35  ;;  %v1733_v35 = vor.u32 %v1873_v27, %v1730_v28  ;;  %v1119_v28 = vld [vmem:[%s2816_s2 + $0x88] sm:$0xff] }
 0x111   :  { %1842 = vmatmul.msk.bf16.gmra.mxu2 %vm858_vm5, %v1725_v61  ;;  %v1669_v61 = vor.u32 %v1859_v57, %v1668_v56  ;;  %v1706_v56 = vld [vmem:[%s2815_s1 + $0xb4] sm:$0xf0] }
 0x114   :  { %v297_v2 = vpop.permute.xlu1 %296  ;;  %v295_v3 = vpop.permute.xlu0 %294 }
 0x115   :  { %308 = vst.msk [vmem:[#allocation2 + $0x54] sm:$0xf] %vm306_vm14, %v297_v2  ;;  %v2425_v5 = vpop.f32.mrf.mxu2  ;;  %v1855_v2 = vld [vmem:[%s2815_s1 + $0x4c] sm:$0xf] }
 0x116   :  { %307 = vst.msk [vmem:[#allocation2 + $0x50] sm:$0xf] %vm306_vm14, %v295_v3  ;;  %v1893_v4 = vld [vmem:[#allocation2 + $0x58] sm:$0xff] }
 0x117   :  { %332 = vst.msk [vmem:[#allocation2 + $0x50] sm:$0xf] %vm331_vm2, %v320_v44  ;;  %968 = vmatpush.bf16.msra.mxu1 %v1893_v4  ;;  %1912 = vmatpush.bf16.msrb.mxu3 %v1893_v4  ;;  %v1656_v44 = vld [vmem:[%s2815_s1 + $0x48] sm:$0xf]  ;;  %v1658_v3 = vld [vmem:[%s2815_s1 + $0x54] sm:$0xf0] }
 0x118   :  { %v1657_v49 = vor.u32 %v1856_v45, %v1656_v44  ;;  %v1760_v4 = vld [vmem:[%s2815_s1 + $0x110] sm:$0xf] }
 0x11a   :  { %918 = vmatmul.bf16.gmra.mxu0 %v1657_v49 }
 0x11c   :  { %v274_v10 = vpop.permute.xlu1 %273  ;;  %v322_v11 = vpop.permute.xlu0 %321 }
 0x11d   :  { %284 = vst.msk [vmem:[#allocation2 + $0x48] sm:$0xf] %vm281_vm1, %v274_v10  ;;  %v2445_v14 = vpop.f32.mrf.mxu2  ;;  %v1661_v10 = vor.u32 %v1855_v2, %v1658_v3  ;;  %v1870_v3 = vld [vmem:[%s2815_s1 + $0xc4] sm:$0xf] }
 0x11e   :  { %333 = vst.msk [vmem:[#allocation2 + $0x54] sm:$0xf] %vm331_vm2, %v322_v11  ;;  %v1761_v11 = vor.u32 %v1881_v6, %v1760_v4  ;;  %v1718_v4 = vld [vmem:[%s2815_s1 + $0xcc] sm:$0xf0] }
 0x11f   :  { %v1721_v9 = vor.u32 %v1870_v3, %v1718_v4 }
 0x121   :  { %1843 = vmatmul.msk.bf16.gmra.mxu2 %vm858_vm5, %v1737_v17  ;;  %v1113_v17 = vld [vmem:[%s2816_s2 + $0x58] sm:$0xff] }
 0x122   :  { %1383 = vperm.xlu2 %1937, %v1113_v17  }
 0x124   :  { %v272_v19 = vpop.permute.xlu1 %271  ;;  %v270_v20 = vpop.permute.xlu0 %269  ;;  %v1891_v24 = vld [vmem:[#allocation2 + $0x48] sm:$0xff] }
 0x125   :  { %283 = vst.msk [vmem:[#allocation2 + $0x44] sm:$0xf] %vm281_vm1, %v272_v19  ;;  %v1892_v21 = vld [vmem:[#allocation2 + $0x50] sm:$0xff]  ;;  %v2456_v22 = vpop.f32.mrf.mxu2 }
 0x126   :  { %282 = vst.msk [vmem:[#allocation2 + $0x40] sm:$0xf] %vm281_vm1, %v270_v20  ;;  %969 = vmatpush.bf16.msra.mxu1 %v1892_v21  ;;  %1913 = vmatpush.bf16.msrb.mxu3 %v1892_v21  ;;  %v1670_v19 = vld [vmem:[%s2815_s1 + $0x6c] sm:$0xf0]  ;;  %v1865_v21 = vld [vmem:[%s2815_s1 + $0x98] sm:$0xf0] }
 0x127   :  { %v1692_v20 = vld [vmem:[%s2815_s1 + $0x90] sm:$0xf]  ;;  %v1673_v23 = vor.u32 %v1858_v18, %v1670_v19 }
 0x128   :  { %v1693_v25 = vor.u32 %v1865_v21, %v1692_v20 }
 0x12a   :  { %970 = vmatpush.bf16.msra.mxu1 %v1891_v24  ;;  %1914 = vmatpush.bf16.msrb.mxu3 %v1891_v24 }
 0x12b   :  { %923 = vmatmul.bf16.gmra.mxu0 %v1669_v61  ;;  %1398 = vperm.xlu2 %1937, %v1116_v26  }
 0x12c   :  { %v1334_v38 = vpop.permute.xlu0 %1333 }
 0x12d   :  { %v1890_v33 = vld [vmem:[#allocation2 + $0x40] sm:$0xff]  ;;  %v2485_v36 = vpop.f32.mrf.mxu2 }
 0x12e   :  { %971 = vmatpush.bf16.msra.mxu1 %v1890_v33  ;;  %1915 = vmatpush.bf16.msrb.mxu3 %v1890_v33  ;;  %v1868_v33 = vld [vmem:[%s2815_s1 + $0xb0] sm:$0xf0] }
 0x131   :  { %972 = vmatmul.bf16.vlgmr.msra.gmra.mxu1 %v1625_v34  ;;  %1017 = vmatmul.bf16.vlgmr.msrb.gmra.mxu3 %v1733_v35  ;;  %v1685_v34 = vor.u32 %v1861_v29, %v1682_v30 }
 0x132   :  { %1916 = vmatpush.bf16.msra.mxu3 %v2189_v63  ;;  %1844 = vmatmul.msk.bf16.gmra.mxu2 %vm858_vm5, %v1749_v37  ;;  %v1849_v63 = vld [vmem:[%s2815_s1 + $0x1c] sm:$0xf]  ;;  %v1705_v37 = vor.u32 %v1868_v33, %v1704_v32 }
 0x133   :  { %v1637_v46 = vor.u32 %v1849_v63, %v1634_v42  ;;  %1413 = vperm.xlu2 %1937, %v1119_v28   ;;  %v1864_v63 = vld [vmem:[%s2815_s1 + $0x94] sm:$0xf]  ;;  %v1694_v42 = vld [vmem:[%s2815_s1 + $0x9c] sm:$0xf0] }
 0x135   :  { %v2496_v41 = vpop.f32.mrf.mxu2 }
 0x136   :  { %1917 = vmatpush.bf16.msra.mxu3 %v2212_v8  ;;  %v1742_v8 = vld [vmem:[%s2815_s1 + $0xfc] sm:$0xf0] }
 0x137   :  { %v1745_v47 = vor.u32 %v1876_v43, %v1742_v8  ;;  %v1697_v43 = vor.u32 %v1864_v63, %v1694_v42  ;;  %v2624_v8 = vpop.permute.xlu0 %1358 }
 0x13b   :  { %928 = vmatmul.bf16.gmra.mxu0 %v1681_v13  ;;  %v1329_v13 = vpop.permute.xlu2 %1328 }
 0x13d   :  { %v2516_v48 = vpop.f32.mrf.mxu2 }
 0x141   :  { %977 = vmatmul.bf16.gmra.mxu1 %v1637_v46  ;;  %1022 = vmatmul.bf16.gmra.mxu3 %v1745_v47  ;;  %v1716_v46 = vld [vmem:[%s2815_s1 + $0xc0] sm:$0xf]  ;;  %v1871_v47 = vld [vmem:[%s2815_s1 + $0xc8] sm:$0xf0]  ;;  %v2638_v54 = vpop.permute.xlu0 %1373 }
 0x142   :  { %v1717_v49 = vor.u32 %v1871_v47, %v1716_v46 }
 0x143   :  { %v1344_v4 = vpop.permute.xlu2 %1343 }
 0x145   :  { %v2521_v51 = vpop.f32.mrf.mxu2 }
 0x14a   :  { %v2650_v62 = vpop.permute.xlu0 %1388 }
 0x14b   :  { %933 = vmatmul.bf16.gmra.mxu0 %v1693_v25 }
 0x14d   :  { %v2541_v60 = vpop.f32.mrf.mxu2 }
 0x151   :  { %982 = vmatmul.bf16.gmra.mxu1 %v1649_v58  ;;  %1027 = vmatmul.bf16.gmra.mxu3 %v1757_v59  ;;  %v1709_v58 = vor.u32 %v1867_v55, %v1706_v56 }
 0x152   :  { %v2662_v7 = vpop.permute.xlu0 %1403 }
 0x155   :  { %v2549_v1 = vpop.f32.mrf.mxu2 }
 0x15b   :  { %938 = vmatmul.bf16.gmra.mxu0 %v1705_v37 }
 0x15d   :  { %v2569_v12 = vpop.f32.mrf.mxu2 }
 0x161   :  { %987 = vmatmul.bf16.gmra.mxu1 %v1661_v10  ;;  %1845 = vmatmul.msk.bf16.vlgmr.msra.gmra.mxu3 %vm858_vm5, %v1761_v11  ;;  %v1419_v26 = vpop.permute.xlu0 %1418 }
 0x165   :  { %v2575_v16 = vpop.f32.mrf.mxu2 }
 0x166   :  { %v904_v45 = vpop.f32.mrf.mxu0 }
 0x16b   :  { %943 = vmatmul.bf16.gmra.mxu0 %v1717_v49 }
 0x16c   :  { %v949_v31 = vpop.f32.mrf.mxu3 }
 0x16d   :  { %v2592_v24 = vpop.f32.mrf.mxu2 }
 0x16e   :  { %v906_v52 = vpop.f32.mrf.mxu0 }
 0x171   :  { %992 = vmatmul.bf16.gmra.mxu1 %v1673_v23 }
 0x174   :  { %v951_v39 = vpop.f32.mrf.mxu3 }
 0x175   :  { %v2597_v27 = vpop.f32.mrf.mxu2 }
 0x176   :  { %v909_v59 = vpop.f32.mrf.mxu0 }
 0x17c   :  { %v2626_v44 = vpop.f32.mrf.mxu3 }
 0x17d   :  { %v2614_v35 = vpop.f32.mrf.mxu2 }
 0x17e   :  { %v911_v2 = vpop.f32.mrf.mxu0 }
 0x181   :  { %997 = vmatmul.bf16.gmra.mxu1 %v1685_v34 }
 0x184   :  { %v2636_v53 = vpop.f32.mrf.mxu3 }
 0x185   :  { %v2616_v40 = vpop.f32.mrf.mxu2 }
 0x186   :  { %v914_v18 = vpop.f32.mrf.mxu0 }
 0x18c   :  { %v2648_v61 = vpop.f32.mrf.mxu3 }
 0x18d   :  { %v2634_v50 = vpop.f32.mrf.mxu2 }
 0x18e   :  { %v916_v63 = vpop.f32.mrf.mxu0 }
 0x191   :  { %1002 = vmatmul.bf16.gmra.mxu1 %v1697_v43 }
 0x194   :  { %v2660_v6 = vpop.f32.mrf.mxu3 }
 0x195   :  { %v2646_v57 = vpop.f32.mrf.mxu2 }
 0x19d   :  { %v2652_v0 = vpop.f32.mrf.mxu2 }
 0x1a1   :  { %1007 = vmatmul.bf16.gmra.mxu1 %v1709_v58 }
 0x1a5   :  { %v1087_v15 = vpop.f32.mrf.mxu2 }
 0x1ad   :  { %v1089_v33 = vpop.f32.mrf.mxu2 }
 0x1ae   :  { %v973_v10 = vpop.f32.mrf.mxu1 }
 0x1af   :  { %v974_v11 = vadd.f32 %v973_v10, %v904_v45 }
 0x1b1   :  { %1012 = vmatmul.bf16.gmra.mxu1 %v1721_v9  ;;  %v1043_v17 = vadd.f32 %v2425_v5, %v974_v11 }
 0x1b3   :  { %v1426_v19 = vadd.f32 %v1329_v13, %v1043_v17 }
 0x1b4   :  { %v1018_v20 = vpop.f32.mrf.mxu3 }
 0x1b5   :  { %v1446_v21 = vmax.f32 %v1426_v19, 0.0  ;;  %v1019_v23 = vadd.f32 %v1018_v20, %v949_v31 }
 0x1b6   :  { %v975_v25 = vpop.f32.mrf.mxu1 }
 0x1b7   :  { %1466 = vst [vmem:[%s2817_s3] sm:$0xff] %v1446_v21  ;;  %v976_v28 = vadd.f32 %v975_v25, %v906_v52  ;;  %v1088_v29 = vadd.f32 %v1087_v15, %v1019_v23  ;;  %v1092_v52 = vpop.f32.mrf.mxu2 }
 0x1b9   :  { %v1045_v30 = vadd.f32 %v2445_v14, %v976_v28  ;;  %v1444_v32 = vadd.f32 %v1419_v26, %v1088_v29  ;;  %v1339_v14 = vpop.permute.xlu1 %1338  ;;  %v1354_v26 = vpop.permute.xlu2 %1353 }
 0x1bb   :  { %v1427_v34 = vadd.f32 %v1334_v38, %v1045_v30  ;;  %v1464_v37 = vmax.f32 %v1444_v32, 0.0 }
 0x1bc   :  { %v1020_v5 = vpop.f32.mrf.mxu3 }
 0x1bd   :  { %v1447_v42 = vmax.f32 %v1427_v34, 0.0  ;;  %1484 = vst [vmem:[%s2817_s3 + $0x90] sm:$0xff] %v1464_v37  ;;  %v1021_v31 = vadd.f32 %v1020_v5, %v951_v39  ;;  %v919_v39 = vpop.f32.mrf.mxu0 }
 0x1be   :  { %v978_v43 = vpop.f32.mrf.mxu1 }
 0x1bf   :  { %1467 = vst [vmem:[%s2817_s3 + $0x8] sm:$0xff] %v1447_v42  ;;  %v979_v45 = vadd.f32 %v978_v43, %v909_v59  ;;  %v2675_v46 = vadd.f32 %v1089_v33, %v1021_v31 }
 0x1c1   :  { %v1048_v38 = vadd.f32 %v2456_v22, %v979_v45  ;;  %v1349_v17 = vpop.permute.xlu1 %1348 }
 0x1c3   :  { %v1428_v47 = vadd.f32 %v1339_v14, %v1048_v38 }
 0x1c4   :  { %v1023_v49 = vpop.f32.mrf.mxu3 }
 0x1c5   :  { %v1448_v55 = vmax.f32 %v1428_v47, 0.0  ;;  %v1024_v56 = vadd.f32 %v1023_v49, %v2626_v44  ;;  %v921_v19 = vpop.f32.mrf.mxu0 }
 0x1c6   :  { %v980_v58 = vpop.f32.mrf.mxu1 }
 0x1c7   :  { %1468 = vst [vmem:[%s2817_s3 + $0x10] sm:$0xff] %v1448_v55  ;;  %v981_v3 = vadd.f32 %v980_v58, %v911_v2  ;;  %v1093_v59 = vadd.f32 %v1092_v52, %v1024_v56 }
 0x1c9   :  { %v1050_v9 = vadd.f32 %v2485_v36, %v981_v3  ;;  %v1487_v22 = vsel %vm1486_vm3, %v1093_v59, 0.0  ;;  %v1369_v3 = vpop.permute.xlu2 %1368 }
 0x1ca   :  { %1488 = vadd.xlane.f32.xlu2 %v1487_v22 }
 0x1cb   :  { %v1429_v10 = vadd.f32 %v1344_v4, %v1050_v9 }
 0x1cc   :  { %v2684_v11 = vpop.f32.mrf.mxu3 }
 0x1cd   :  { %v1449_v13 = vmax.f32 %v1429_v10, 0.0  ;;  %v924_v29 = vpop.f32.mrf.mxu0 }
 0x1ce   :  { %v983_v44 = vpop.f32.mrf.mxu1 }
 0x1cf   :  { %1469 = vst [vmem:[%s2817_s3 + $0x18] sm:$0xff] %v1449_v13  ;;  %v984_v15 = vadd.f32 %v983_v44, %v914_v18 }
 0x1d1   :  { %v1053_v2 = vadd.f32 %v2496_v41, %v984_v15 }
 0x1d3   :  { %v1430_v20 = vadd.f32 %v1349_v17, %v1053_v2  ;;  %v1094_v2 = vpop.f32.mrf.mxu2 }
 0x1d4   :  { %v1028_v21 = vpop.f32.mrf.mxu3 }
 0x1d5   :  { %v1450_v36 = vmax.f32 %v1430_v20, 0.0  ;;  %v1029_v37 = vadd.f32 %v1028_v21, %v2648_v61  ;;  %v926_v42 = vpop.f32.mrf.mxu0 }
 0x1d6   :  { %v985_v23 = vpop.f32.mrf.mxu1 }
 0x1d7   :  { %1470 = vst [vmem:[%s2817_s3 + $0x20] sm:$0xff] %v1450_v36  ;;  %v986_v25 = vadd.f32 %v985_v23, %v916_v63  ;;  %v1384_v36 = vpop.permute.xlu2 %1383 }
 0x1d9   :  { %v1055_v28 = vadd.f32 %v2516_v48, %v986_v25 }
 0x1db   :  { %v1431_v30 = vadd.f32 %v1354_v26, %v1055_v28 }
 0x1dc   :  { %v1030_v32 = vpop.f32.mrf.mxu3 }
 0x1dd   :  { %v1451_v18 = vmax.f32 %v1431_v30, 0.0  ;;  %v929_v56 = vpop.f32.mrf.mxu0 }
 0x1de   :  { %v988_v33 = vpop.f32.mrf.mxu1 }
 0x1df   :  { %1471 = vst [vmem:[%s2817_s3 + $0x28] sm:$0xff] %v1451_v18  ;;  %v989_v41 = vadd.f32 %v988_v33, %v919_v39  ;;  %v1115_v18 = vld [vmem:[%s2816_s2 + $0x68] sm:$0xff] }
 0x1e1   :  { %v1058_v34 = vadd.f32 %v2521_v51, %v989_v41  ;;  %v1364_v51 = vpop.permute.xlu1 %1363 }
 0x1e3   :  { %v1432_v5 = vadd.f32 %v2624_v8, %v1058_v34  ;;  %v1031_v8 = vadd.f32 %v1030_v32, %v2660_v6 }
 0x1e4   :  { %v1097_v63 = vpop.f32.mrf.mxu3 }
 0x1e5   :  { %v1452_v31 = vmax.f32 %v1432_v5, 0.0  ;;  %v1098_v48 = vadd.f32 %v1097_v63, %v1029_v37  ;;  %v931_v10 = vpop.f32.mrf.mxu0  ;;  %v1399_v5 = vpop.permute.xlu2 %1398 }
 0x1e6   :  { %v990_v43 = vpop.f32.mrf.mxu1 }
 0x1e7   :  { %1472 = vst [vmem:[%s2817_s3 + $0x30] sm:$0xff] %v1452_v31  ;;  %v991_v45 = vadd.f32 %v990_v43, %v921_v19  ;;  %1518 = vrot.lane.b32.xlu0 %v1098_v48, %s1959_s4  ;;  %v1493_v14 = vsel %vm1486_vm3, %v1098_v48, 0.0  ;;  %v1026_v19 = vadd.f32 %v2684_v11, %v2636_v53 }
 0x1e8   :  { %1494 = vadd.xlane.f32.xlu1 %v1493_v14 }
 0x1e9   :  { %v1060_v61 = vadd.f32 %v2541_v60, %v991_v45  ;;  %v1095_v21 = vadd.f32 %v1094_v2, %v1026_v19  ;;  %v1121_v45 = vld [vmem:[%s2816_s2 + $0x98] sm:$0xff]  ;;  %v1124_v2 = vld [vmem:[%s2816_s2 + $0xb0] sm:$0xff] }
 0x1eb   :  { %v1433_v38 = vadd.f32 %v1364_v51, %v1060_v61  ;;  %v1490_v34 = vsel %vm1486_vm3, %v1095_v21, 0.0 }
 0x1ec   :  { %v1099_v47 = vpop.f32.mrf.mxu3 }
 0x1ed   :  { %v1453_v49 = vmax.f32 %v1433_v38, 0.0  ;;  %v1100_v52 = vadd.f32 %v1099_v47, %v1031_v8  ;;  %v934_v17 = vpop.f32.mrf.mxu0  ;;  %v1122_v47 = vld [vmem:[%s2816_s2 + $0xa0] sm:$0xff] }
 0x1ee   :  { %v993_v55 = vpop.f32.mrf.mxu1 }
 0x1ef   :  { %1473 = vst [vmem:[%s2817_s3 + $0x38] sm:$0xff] %v1453_v49  ;;  %v994_v58 = vadd.f32 %v993_v55, %v924_v29  ;;  %1514 = vrot.lane.b32.xlu0 %v1093_v59, %s1959_s4  ;;  %v1496_v39 = vsel %vm1486_vm3, %v1100_v52, 0.0  ;;  %v1112_v29 = vld [vmem:[%s2816_s2 + $0x50] sm:$0xff] }
 0x1f0   :  { %1497 = vadd.xlane.f32.xlu2 %v1496_v39 }
 0x1f1   :  { %v1063_v60 = vadd.f32 %v2549_v1, %v994_v58  ;;  %v1414_v58 = vpop.permute.xlu2 %1413 }
 0x1f3   :  { %v1434_v6 = vadd.f32 %v1369_v3, %v1063_v60 }
 0x1f5   :  { %v1454_v4 = vmax.f32 %v1434_v6, 0.0  ;;  %v936_v25 = vpop.f32.mrf.mxu0 }
 0x1f6   :  { %v995_v9 = vpop.f32.mrf.mxu1 }
 0x1f7   :  { %1474 = vst [vmem:[%s2817_s3 + $0x40] sm:$0xff] %v1454_v4  ;;  %v996_v22 = vadd.f32 %v995_v9, %v926_v42 }
 0x1f9   :  { %v1065_v13 = vadd.f32 %v2569_v12, %v996_v22 }
 0x1fb   :  { %v1435_v44 = vadd.f32 %v2638_v54, %v1065_v13 }
 0x1fd   :  { %v1455_v59 = vmax.f32 %v1435_v44, 0.0  ;;  %v939_v33 = vpop.f32.mrf.mxu0 }
 0x1fe   :  { %v998_v15 = vpop.f32.mrf.mxu1 }
 0x1ff   :  { %1475 = vst [vmem:[%s2817_s3 + $0x48] sm:$0xff] %v1455_v59  ;;  %v2721_v1 = vadd.f32 %v998_v15, %v929_v56 }
 0x201   :  { %1520 = vrot.lane.b32.xlu1 %v1100_v52, %s1959_s4  ;;  %v1068_v59 = vadd.f32 %v2575_v16, %v2721_v1  ;;  %v1123_v1 = vld [vmem:[%s2816_s2 + $0xa8] sm:$0xff] }
 0x205   :  { %v941_v63 = vpop.f32.mrf.mxu0 }
 0x206   :  { %v1000_v20 = vpop.f32.mrf.mxu1 }
 0x207   :  { %v1001_v12 = vadd.f32 %v1000_v20, %v931_v10 }
 0x209   :  { %1516 = vrot.lane.b32.xlu1 %v1095_v21, %s1959_s4  ;;  %v1070_v54 = vadd.f32 %v2592_v24, %v1001_v12 }
 0x20b   :  { %v1437_v23 = vadd.f32 %v1384_v36, %v1070_v54 }
 0x20d   :  { %v1457_v26 = vmax.f32 %v1437_v23, 0.0  ;;  %v944_v61 = vpop.f32.mrf.mxu0 }
 0x20e   :  { %v1003_v28 = vpop.f32.mrf.mxu1 }
 0x20f   :  { %1477 = vst [vmem:[%s2817_s3 + $0x58] sm:$0xff] %v1457_v26  ;;  %v1004_v53 = vadd.f32 %v1003_v28, %v934_v17 }
 0x211   :  { %v1073_v11 = vadd.f32 %v2597_v27, %v1004_v53  ;;  %1378 = vperm.xlu1 %1939, %v1112_v29  }
 0x213   :  { %v1438_v30 = vadd.f32 %v2650_v62, %v1073_v11  ;;  %v1118_v62 = vld [vmem:[%s2816_s2 + $0x80] sm:$0xff] }
 0x215   :  { %v1458_v32 = vmax.f32 %v1438_v30, 0.0  ;;  %v946_v52 = vpop.f32.mrf.mxu0 }
 0x216   :  { %v1005_v24 = vpop.f32.mrf.mxu1 }
 0x217   :  { %1478 = vst [vmem:[%s2817_s3 + $0x60] sm:$0xff] %v1458_v32  ;;  %v1006_v41 = vadd.f32 %v1005_v24, %v936_v25 }
 0x219   :  { %1393 = vperm.xlu1 %1939, %v1115_v18   ;;  %1491 = vadd.xlane.f32.xlu0 %v1490_v34  ;;  %v1075_v20 = vadd.f32 %v2614_v35, %v1006_v41 }
 0x21e   :  { %v1008_v27 = vpop.f32.mrf.mxu1 }
 0x21f   :  { %v1009_v37 = vadd.f32 %v1008_v27, %v939_v33 }
 0x221   :  { %1408 = vperm.xlu1 %1939, %v1118_v62   ;;  %v1078_v42 = vadd.f32 %v2616_v40, %v1009_v37 }
 0x223   :  { %v1440_v31 = vadd.f32 %v1399_v5, %v1078_v42 }
 0x225   :  { %v1460_v48 = vmax.f32 %v1440_v31, 0.0 }
 0x226   :  { %v1010_v43 = vpop.f32.mrf.mxu1 }
 0x227   :  { %1480 = vst [vmem:[%s2817_s3 + $0x70] sm:$0xff] %v1460_v48  ;;  %v1011_v14 = vadd.f32 %v1010_v43, %v941_v63 }
 0x229   :  { %v1080_v51 = vadd.f32 %v2634_v50, %v1011_v14  ;;  %1423 = vperm.xlu1 %1939, %v1121_v45   ;;  %v1125_v50 = vld [vmem:[%s2816_s2 + $0xb8] sm:$0xff] }
 0x22b   :  { %v1441_v8 = vadd.f32 %v2662_v7, %v1080_v51 }
 0x22d   :  { %v1461_v38 = vmax.f32 %v1441_v8, 0.0 }
 0x22e   :  { %v1013_v40 = vpop.f32.mrf.mxu1 }
 0x22f   :  { %1481 = vst [vmem:[%s2817_s3 + $0x78] sm:$0xff] %v1461_v38  ;;  %v1014_v49 = vadd.f32 %v1013_v40, %v944_v61 }
 0x231   :  { %1548 = vperm.xlu1 %1939, %v1122_v47   ;;  %v1083_v16 = vadd.f32 %v2646_v57, %v1014_v49  ;;  %v1960_v57 = vmov 64.0  }
 0x232   :  { %1940 = vrcp.f32 %v1960_v57 }
 0x236   :  { %v1015_v55 = vpop.f32.mrf.mxu1 }
 0x237   :  { %v1016_v56 = vadd.f32 %v1015_v55, %v946_v52 }
 0x238   :  { %v1941_v53 = vpop.eup %1940 }
 0x239   :  { %v1085_v7 = vadd.f32 %v2652_v0, %v1016_v56  ;;  %1563 = vperm.xlu1 %1939, %v1125_v50   ;;  %v1500_v11 = vmul.f32 64.0, %v1941_v53  ;;  %vm1504_vm4 = vweird.f32 %v1941_v53 }
 0x23b   :  { %v1443_v39 = vadd.f32 %v1414_v58, %v1085_v7  ;;  %v1501_v32 = vsub.f32 1.0, %v1500_v11 }
 0x23d   :  { %v1463_v3 = vmax.f32 %v1443_v39, 0.0  ;;  %v1489_v29 = vpop.xlane.xlu2 %1488  ;;  %v1502_v24 = vmul.f32 %v1941_v53, %v1501_v32 }
 0x23f   :  { %1483 = vst [vmem:[%s2817_s3 + $0x88] sm:$0xff] %v1463_v3  ;;  %v1503_v33 = vadd.f32 %v1941_v53, %v1502_v24 }
 0x241   :  { %v1505_v41 = vsel %vm1504_vm4, %v1941_v53, %v1503_v33 }
 0x242   :  { %v1506_v27 = vmul.f32 %v1505_v41, %v1489_v29 }
 0x259   :  { %v1519_v60 = vpop.permute.xlu0 %1518 }
 0x25a   :  { %v1532_v6 = vsel %vm1486_vm3, %v1519_v60, 0.0 }
 0x25b   :  { %1533 = vadd.xlane.f32.xlu2 %v1532_v6  ;;  %v2770_v22 = vpop.xlane.xlu1 %1494 }
 0x25c   :  { %v1508_v55 = vmul.f32 %v1505_v41, %v2770_v22 }
 0x261   :  { %v1515_v4 = vpop.permute.xlu0 %1514 }
 0x262   :  { %v1526_v9 = vsel %vm1486_vm3, %v1515_v4, 0.0 }
 0x263   :  { %1527 = vadd.xlane.f32.xlu2 %v1526_v9  ;;  %v1498_v30 = vpop.xlane.xlu2 %1497 }
 0x264   :  { %v1509_v48 = vmul.f32 %v1505_v41, %v1498_v30 }
 0x273   :  { %v1521_v10 = vpop.permute.xlu1 %1520 }
 0x274   :  { %v1535_v0 = vsel %vm1486_vm3, %v1521_v10, 0.0 }
 0x275   :  { %1536 = vadd.xlane.f32.xlu0 %v1535_v0 }
 0x27b   :  { %v1517_v13 = vpop.permute.xlu1 %1516 }
 0x27c   :  { %v1529_v44 = vsel %vm1486_vm3, %v1517_v13, 0.0 }
 0x27d   :  { %1530 = vadd.xlane.f32.xlu2 %v1529_v44 }
 0x283   :  { %v1379_v15 = vpop.permute.xlu1 %1378 }
 0x284   :  { %v1436_v17 = vadd.f32 %v1379_v15, %v1068_v59 }
 0x286   :  { %v1456_v19 = vmax.f32 %v1436_v17, 0.0 }
 0x288   :  { %1476 = vst [vmem:[%s2817_s3 + $0x50] sm:$0xff] %v1456_v19 }
 0x289   :  { %1558 = vperm.xlu0 %1938, %v1124_v2  }
 0x28b   :  { %v1394_v21 = vpop.permute.xlu1 %1393 }
 0x28c   :  { %v1439_v12 = vadd.f32 %v1394_v21, %v1075_v20  ;;  %v1492_v42 = vpop.xlane.xlu0 %1491 }
 0x28d   :  { %v1507_v40 = vmul.f32 %v1505_v41, %v1492_v42 }
 0x28e   :  { %v1459_v36 = vmax.f32 %v1439_v12, 0.0 }
 0x290   :  { %1479 = vst [vmem:[%s2817_s3 + $0x68] sm:$0xff] %v1459_v36 }
 0x293   :  { %v1409_v54 = vpop.permute.xlu1 %1408 }
 0x294   :  { %v1442_v23 = vadd.f32 %v1409_v54, %v1083_v16 }
 0x295   :  { %1553 = vperm.xlu2 %1937, %v1123_v1  }
 0x296   :  { %v1462_v25 = vmax.f32 %v1442_v23, 0.0 }
 0x298   :  { %1482 = vst [vmem:[%s2817_s3 + $0x80] sm:$0xff] %v1462_v25 }
 0x29b   :  { %v1424_v35 = vpop.permute.xlu1 %1423 }
 0x29c   :  { %v1445_v26 = vadd.f32 %v1424_v35, %v2675_v46 }
 0x29e   :  { %v1465_v28 = vmax.f32 %v1445_v26, 0.0 }
 0x2a0   :  { %1485 = vst [vmem:[%s2817_s3 + $0x98] sm:$0xff] %v1465_v28 }
 0x2a3   :  { %v1549_v62 = vpop.permute.xlu1 %1548 }
 0x2ab   :  { %v1564_v45 = vpop.permute.xlu1 %1563 }
 0x2ce   :  { %v1534_v18 = vpop.xlane.xlu2 %1533 }
 0x2cf   :  { %v1540_v47 = vmul.f32 %v1534_v18, %v1505_v41 }
 0x2d1   :  { %v1544_v7 = vsel %vm1486_vm3, %v1508_v55, %v1540_v47 }
 0x2d6   :  { %v1528_v34 = vpop.xlane.xlu2 %1527 }
 0x2d7   :  { %v1538_v46 = vmul.f32 %v1528_v34, %v1505_v41 }
 0x2d9   :  { %v1542_v37 = vsel %vm1486_vm3, %v1506_v27, %v1538_v46 }
 0x2da   :  { %v1566_v5 = vadd.f32 %v1549_v62, %v1542_v37 }
 0x2dc   :  { %v1570_v63 = vmax.f32 %v1566_v5, 0.0 }
 0x2de   :  { %1574 = vst [vmem:[%s2817_s3 + $0xa0] sm:$0xff] %v1570_v63 }
 0x2e8   :  { %v1537_v31 = vpop.xlane.xlu0 %1536 }
 0x2e9   :  { %v1541_v43 = vmul.f32 %v1537_v31, %v1505_v41 }
 0x2eb   :  { %v1545_v14 = vsel %vm1486_vm3, %v1509_v48, %v1541_v43 }
 0x2ec   :  { %v1569_v51 = vadd.f32 %v1564_v45, %v1545_v14 }
 0x2ee   :  { %v1573_v61 = vmax.f32 %v1569_v51, 0.0 }
 0x2f0   :  { %1577 = vst [vmem:[%s2817_s3 + $0xb8] sm:$0xff] %v1573_v61  ;;  %v1531_v8 = vpop.xlane.xlu2 %1530 }
 0x2f1   :  { %v1539_v38 = vmul.f32 %v1531_v8, %v1505_v41 }
 0x2f3   :  { %v1543_v52 = vsel %vm1486_vm3, %v1507_v40, %v1539_v38 }
 0x2f8   :  { %v1554_v49 = vpop.permute.xlu2 %1553 }
 0x2f9   :  { %v1567_v50 = vadd.f32 %v1554_v49, %v1543_v52 }
 0x2fb   :  { %v1571_v56 = vmax.f32 %v1567_v50, 0.0  ;;  %v1559_v58 = vpop.permute.xlu0 %1558 }
 0x2fc   :  { %v1568_v39 = vadd.f32 %v1559_v58, %v1544_v7 }
 0x2fd   :  { %1575 = vst [vmem:[%s2817_s3 + $0xa8] sm:$0xff] %v1571_v56 }
 0x2fe   :  { %v1572_v3 = vmax.f32 %v1568_v39, 0.0 }
 0x300   :  { %1576 = vst [vmem:[%s2817_s3 + $0xb0] sm:$0xff] %v1572_v3 }

</bundles_post_ra>
